<compile_context>
chip_gen: v5e
topology: v5e:2x2
jax: 0.10.0
libtpu: 0.0.40
codegen_flags: <defaults>
</compile_context>

<pallas_src>
import functools
import math

import numpy as np
import jax
import jax.numpy as jnp
from jax import lax
from jax.experimental import pallas as pl
from jax.experimental.pallas import tpu as pltpu

BN_EPS = 1e-3  # nn.BatchNorm2d(eps=0.001)


def _round_up(x, m):
    return ((x + m - 1) // m) * m


# ---------------------------------------------------------------------------
# Shared in-kernel conv helper (3x3 conv with the 1x1 conv pre-folded in)
# ---------------------------------------------------------------------------
def _conv_tile(x_ref, w_ref, row0, *, th, wp, ci):
    """Conv for one tile of `th` output image rows.

    x_ref : (H_pad+2, Wp+2, Ci)  padded NHWC image slab (resident per image)
    w_ref : (9, Ci, Cp)          fused tap weights (resident across the grid)
    row0  : dynamic scalar, first output row of this tile
    returns (th*wp, Cp) float32
    """
    acc = None
    for t in range(9):
        ky, kx = divmod(t, 3)
        tap = x_ref[pl.ds(row0 + ky, th), pl.ds(kx, wp), :]      # (th, wp, Ci)
        tap = tap.reshape(th * wp, ci)                            # wp % 8 == 0 -> cheap merge
        part = jnp.dot(tap, w_ref[t], preferred_element_type=jnp.float32)
        acc = part if acc is None else acc + part
    return acc


# ---------------------------------------------------------------------------
# Kernels
# ---------------------------------------------------------------------------
def _stats_kernel(x_ref, w_ref, sum_ref, ssq_ref, *, th, wp, ci, mask_hw):
    """Pass 1: recompute conv tile and accumulate per-channel sum / sum-of-squares.

    sum_ref / ssq_ref : (1, 1, Cp) slot owned by this batch image (resident across row tiles).
    mask_hw           : None, or (H, W) true spatial extent when padding rows/cols exist.
    """
    r = pl.program_id(1)

    @pl.when(r == 0)
    def _():
        sum_ref[...] = jnp.zeros_like(sum_ref)
        ssq_ref[...] = jnp.zeros_like(ssq_ref)

    row0 = r * th
    y = _conv_tile(x_ref, w_ref, row0, th=th, wp=wp, ci=ci)       # (th*wp, Cp) f32

    if mask_hw is not None:
        # Padded rows/cols see real pixels through the 3x3 halo, so their conv output is NOT
        # zero; exclude them from the BN statistics.  Only emitted when padding exists.
        h_valid, w_valid = mask_hw
        idx = lax.broadcasted_iota(jnp.int32, (th * wp, 1), 0)
        r_img = row0 + idx // wp
        c_img = idx % wp
        y = jnp.where((r_img < h_valid) & (c_img < w_valid), y, 0.0)

    s = jnp.sum(y, axis=0, keepdims=True)                         # (1, Cp)
    q = jnp.sum(y * y, axis=0, keepdims=True)                     # (1, Cp)
    sum_ref[...] += s[:, None, :]
    ssq_ref[...] += q[:, None, :]


def _apply_kernel(x_ref, w_ref, scale_ref, shift_ref, o_ref, *, th, wp, ci):
    """Pass 2: recompute conv tile, apply BN folded to a per-channel affine, ReLU, store."""
    row0 = pl.program_id(1) * th
    y = _conv_tile(x_ref, w_ref, row0, th=th, wp=wp, ci=ci)       # (th*wp, Cp) f32
    o_ref[...] = jnp.maximum(y * scale_ref[...] + shift_ref[...], 0.0).astype(o_ref.dtype)


# ---------------------------------------------------------------------------
# Parameters
# ---------------------------------------------------------------------------
def init_params(key, C):
    """Deterministic params with PyTorch-default-like init shapes."""
    k1, k2, k3, k4 = jax.random.split(key, 4)
    b1w = 1.0 / math.sqrt(C * 3 * 3)
    b2w = 1.0 / math.sqrt(C * 1 * 1)
    return {
        "w1": jax.random.uniform(k1, (C, C, 3, 3), jnp.float32, -b1w, b1w),  # (Cout, Cin, kh, kw)
        "b1": jax.random.uniform(k2, (C,), jnp.float32, -b1w, b1w),
        "w2": jax.random.uniform(k3, (C, C, 1, 1), jnp.float32, -b2w, b2w),
        "b2": jax.random.uniform(k4, (C,), jnp.float32, -b2w, b2w),
        "gamma": jnp.ones((C,), jnp.float32),
        "beta": jnp.zeros((C,), jnp.float32),
    }


# ---------------------------------------------------------------------------
# Wrapper
# ---------------------------------------------------------------------------
def conv_block(x_nchw, params, *, matmul_dtype=jnp.bfloat16, out_dtype=None, target_rows=1024):
    """ConvBlock forward.  x is NCHW; returns NCHW (training-mode BatchNorm, ReLU)."""
    N, C, H, W = x_nchw.shape
    out_dtype = matmul_dtype if out_dtype is None else out_dtype

    Ci = max(128, _round_up(C, 128))    # lane-dense contraction channels (zero padded)
    Cp = max(128, _round_up(C, 128))    # lane-dense output channels
    Wp = _round_up(W, 8)                # keep flattened (rows*Wp) sublane-aligned

    # Row-tile selection: big tiles amortize the ~0.35us/step grid overhead.
    if H * Wp <= 2 * target_rows:
        TH = H
    else:
        TH = min(H, max(1, target_rows // Wp))
    n_rt = pl.cdiv(H, TH)
    H_pad = n_rt * TH

    # ---- glue (XLA, small): cast to matmul dtype first, NCHW -> NHWC, ONE pad op ----
    # pad = (1-pixel conv halo) + (bottom rows / right cols to tile evenly) + (channel lanes)
    x_slab = jnp.pad(
        jnp.transpose(x_nchw.astype(matmul_dtype), (0, 2, 3, 1)),
        ((0, 0), (1, 1 + H_pad - H), (1, 1 + Wp - W), (0, Ci - C)),
    )  # (N, H_pad+2, Wp+2, Ci)

    # ---- fold the 1x1 conv into the 3x3 conv (exact: no nonlinearity between them) ----
    # torch w1 (Cout1,Cin,3,3) -> (3,3,Cin,Cout1) -> (9,Cin,Cout1); w2 (Cout2,Cout1,1,1)
    w1_taps = jnp.transpose(params["w1"], (2, 3, 1, 0)).reshape(9, C, C)
    w2_mat = params["w2"][:, :, 0, 0].T                             # (Cout1, Cout2)
    w_fused = jnp.einsum("tic,co->tio", w1_taps, w2_mat,
                         precision=lax.Precision.HIGHEST)           # (9, Cin, Cout2)
    w_fused_p = jnp.pad(w_fused, ((0, 0), (0, Ci - C), (0, Cp - C))).astype(matmul_dtype)
    # NOTE: the fused conv bias (b1 @ W2 + b2) cancels exactly under training-mode BatchNorm
    # (per-channel shift invariance), so it is intentionally not applied.  This kernel is
    # ONLY valid for BN in training mode (batch statistics).

    # ---- VMEM budget (only raise the scoped limit when the defaults would be tight) ----
    item = jnp.dtype(matmul_dtype).itemsize
    slab_bytes = (H_pad + 2) * (Wp + 2) * Ci * item
    w_bytes = 9 * Ci * Cp * item
    tile_bytes = TH * Wp * Cp * 4
    vmem_est = 2 * slab_bytes + 2 * w_bytes + 3 * tile_bytes + (2 << 20)
    vmem_kwargs = {}
    if vmem_est > 10 * 2**20:
        # v5e scoped-VMEM default is 16 MiB (v6e/v7x: 32 MiB); cap well under v7x's 64 MiB.
        vmem_kwargs["vmem_limit_bytes"] = min(_round_up(vmem_est, 2**20), 48 * 2**20)

    mask_hw = None if (H_pad == H and Wp == W) else (H, W)
    slab_spec = pl.BlockSpec((None, H_pad + 2, Wp + 2, Ci), lambda n, r: (n, 0, 0, 0))
    w_spec = pl.BlockSpec((9, Ci, Cp), lambda n, r: (0, 0, 0))

    # ---- pass 1: BN statistics only (per-image accumulator slots, batch axis parallel) ----
    stats_kernel = functools.partial(_stats_kernel, th=TH, wp=Wp, ci=Ci, mask_hw=mask_hw)
    ssum, ssq = pl.pallas_call(
        stats_kernel,
        out_shape=(jax.ShapeDtypeStruct((N, 1, Cp), jnp.float32),
                   jax.ShapeDtypeStruct((N, 1, Cp), jnp.float32)),
        grid=(N, n_rt),
        in_specs=[slab_spec, w_spec],
        out_specs=(pl.BlockSpec((1, 1, Cp), lambda n, r: (n, 0, 0)),
                   pl.BlockSpec((1, 1, Cp), lambda n, r: (n, 0, 0))),
        compiler_params=pltpu.CompilerParams(
            dimension_semantics=("parallel", "arbitrary"), **vmem_kwargs),
    )(x_slab, w_fused_p)

    # ---- fold training-mode BN into one per-channel affine (tiny, stays in XLA) ----
    inv_n = 1.0 / float(N * H * W)
    sum_c = jnp.sum(ssum[:, 0, :], axis=0, keepdims=True)           # (1, Cp)
    ssq_c = jnp.sum(ssq[:, 0, :], axis=0, keepdims=True)            # (1, Cp)
    mean = sum_c * inv_n
    var = jnp.maximum(ssq_c * inv_n - mean * mean, 0.0)             # guard tiny cancellation
    gp = jnp.pad(params["gamma"], (0, Cp - C))[None, :]
    bp = jnp.pad(params["beta"], (0, Cp - C))[None, :]
    scale = gp * lax.rsqrt(var + BN_EPS)
    shift = bp - mean * scale

    # ---- pass 2: recompute conv, apply affine + ReLU, lane-dense stores (no y in HBM) ----
    apply_kernel = functools.partial(_apply_kernel, th=TH, wp=Wp, ci=Ci)
    out = pl.pallas_call(
        apply_kernel,
        out_shape=jax.ShapeDtypeStruct((N, H_pad * Wp, Cp), out_dtype),
        grid=(N, n_rt),
        in_specs=[slab_spec, w_spec,
                  pl.BlockSpec((1, Cp), lambda n, r: (0, 0)),
                  pl.BlockSpec((1, Cp), lambda n, r: (0, 0))],
        out_specs=pl.BlockSpec((None, TH * Wp, Cp), lambda n, r: (n, r, 0)),
        compiler_params=pltpu.CompilerParams(
            dimension_semantics=("parallel", "parallel"), **vmem_kwargs),
    )(x_slab, w_fused_p, scale, shift)

    # Drop spatial/channel padding and return NCHW to match the PyTorch reference.
    # TODO(synk): in the full Detector, keep activations NHWC across the BiFPN/head and
    #             transpose only once at the model boundary.
    out = out.reshape(N, H_pad, Wp, Cp)[:, :H, :W, :C]
    return jnp.transpose(out, (0, 3, 1, 2))


# ---------------------------------------------------------------------------
# Pure-JAX reference (matches the PyTorch forward: BN in training mode)
# ---------------------------------------------------------------------------
def conv_block_reference(x_nchw, params):
    y = lax.conv_general_dilated(
        x_nchw, params["w1"], window_strides=(1, 1), padding=((1, 1), (1, 1)),
        dimension_numbers=("NCHW", "OIHW", "NCHW"))
    y = y + params["b1"][None, :, None, None]
    y = lax.conv_general_dilated(
        y, params["w2"], window_strides=(1, 1), padding=((0, 0), (0, 0)),
        dimension_numbers=("NCHW", "OIHW", "NCHW"))
    y = y + params["b2"][None, :, None, None]
    mean = jnp.mean(y, axis=(0, 2, 3), keepdims=True)
    var = jnp.mean(jnp.square(y - mean), axis=(0, 2, 3), keepdims=True)
    y = (y - mean) * lax.rsqrt(var + BN_EPS)
    y = y * params["gamma"][None, :, None, None] + params["beta"][None, :, None, None]
    return jnp.maximum(y, 0.0)


if __name__ == "__main__":
    key = jax.random.PRNGKey(0)
    kx_, kp_ = jax.random.split(key)

    N, C, H, W = 2, 4, 16, 16
    x = jax.random.normal(kx_, (N, C, H, W), jnp.float32)
    params = init_params(kp_, C)
    ref = jax.block_until_ready(conv_block_reference(x, params))

    # exact-algorithm check: f32 MXU inputs/output, one row tile per image
    out = jax.block_until_ready(conv_block(x, params, matmul_dtype=jnp.float32))
    assert out.shape == (N, C, H, W), out.shape
    np.testing.assert_allclose(np.asarray(out), np.asarray(ref), rtol=1e-4, atol=1e-4)

    # multi row-tile grid: resident per-image slab, pipelined tiles, accumulated stats
    out_t = jax.block_until_ready(
        conv_block(x, params, matmul_dtype=jnp.float32, target_rows=64))
    np.testing.assert_allclose(np.asarray(out_t), np.asarray(ref), rtol=1e-4, atol=1e-4)

    # odd spatial size: exercises width/row padding + masked statistics
    x2 = jax.random.normal(jax.random.PRNGKey(1), (N, C, 15, 15), jnp.float32)
    ref2 = jax.block_until_ready(conv_block_reference(x2, params))
    out2 = jax.block_until_ready(
        conv_block(x2, params, matmul_dtype=jnp.float32, target_rows=64))
    np.testing.assert_allclose(np.asarray(out2), np.asarray(ref2), rtol=1e-4, atol=1e-4)

    # performance path: bf16 slab/weights/output, f32 MXU accumulation + f32 BN stats
    out_bf = jax.block_until_ready(conv_block(x, params))
    np.testing.assert_allclose(np.asarray(out_bf).astype(np.float32), np.asarray(ref),
                               rtol=2e-2, atol=2e-2)

    print("KERNEL_OK")
</pallas_src>

<mosaic_0001>
module attributes {stable_mosaic.version = 11 : i64} {
  func.func @_stats_kernel(%arg0: i32, %arg1: i32, %arg2: memref<1x18x18x128xf32, #tpu.memory_space<vmem>>, %arg3: memref<9x128x128xf32, #tpu.memory_space<vmem>>, %arg4: memref<1x1x128xf32, #tpu.memory_space<vmem>>, %arg5: memref<1x1x128xf32, #tpu.memory_space<vmem>>) attributes {dimension_semantics = [#tpu.dimension_semantics<parallel>, #tpu.dimension_semantics<arbitrary>], iteration_bounds = array<i64: 2, 1>, scalar_prefetch = 0 : i64, scratch_operands = 0 : i64, tpu.core_type = #tpu.core_type<tc>, window_params = [{transform_indices = @transform_0, window_bounds = array<i64: 1, 18, 18, 128>}, {pipeline_mode = #tpu.pipeline_mode<synchronous>, transform_indices = @transform_1, window_bounds = array<i64: 9, 128, 128>}, {transform_indices = @transform_2, window_bounds = array<i64: 1, 1, 128>}, {transform_indices = @transform_3, window_bounds = array<i64: 1, 1, 128>}]} {
    %c0_i32 = arith.constant 0 : i32
    %0 = arith.cmpi eq, %arg1, %c0_i32 : i32
    %1 = arith.extui %0 : i1 to i32
    %c0_i32_0 = arith.constant 0 : i32
    %2 = arith.cmpi ne, %1, %c0_i32_0 : i32
    scf.if %2 {
      %cst_75 = arith.constant 0.000000e+00 : f32
      %97 = vector.broadcast %cst_75 : f32 to vector<1x1x128xf32>
      %c0_76 = arith.constant 0 : index
      %c0_77 = arith.constant 0 : index
      %c0_78 = arith.constant 0 : index
      %98 = vector.load %arg4[%c0_76, %c0_77, %c0_78] : memref<1x1x128xf32, #tpu.memory_space<vmem>>, vector<1x1x128xf32>
      tpu.vector_store %arg4[%c0_76, %c0_77, %c0_78], %97 {strides = array<i32>} : memref<1x1x128xf32, #tpu.memory_space<vmem>>, vector<1x1x128xf32>,
      %cst_79 = arith.constant 0.000000e+00 : f32
      %99 = vector.broadcast %cst_79 : f32 to vector<1x1x128xf32>
      %c0_80 = arith.constant 0 : index
      %c0_81 = arith.constant 0 : index
      %c0_82 = arith.constant 0 : index
      %100 = vector.load %arg5[%c0_80, %c0_81, %c0_82] : memref<1x1x128xf32, #tpu.memory_space<vmem>>, vector<1x1x128xf32>
      tpu.vector_store %arg5[%c0_80, %c0_81, %c0_82], %99 {strides = array<i32>} : memref<1x1x128xf32, #tpu.memory_space<vmem>>, vector<1x1x128xf32>,
    } else {
    }
    %c16_i32 = arith.constant 16 : i32
    %3 = arith.muli %arg1, %c16_i32 : i32
    %c0_i32_1 = arith.constant 0 : i32
    %4 = arith.addi %3, %c0_i32_1 : i32
    %c0 = arith.constant 0 : index
    %5 = arith.index_cast %4 : i32 to index
    %c0_2 = arith.constant 0 : index
    %c0_3 = arith.constant 0 : index
    %6 = vector.load %arg2[%c0, %5, %c0_2, %c0_3] : memref<1x18x18x128xf32, #tpu.memory_space<vmem>>, vector<1x16x16x128xf32>
    %7 = vector.shape_cast %6 : vector<1x16x16x128xf32> to vector<16x16x128xf32>
    %8 = vector.shape_cast %7 : vector<16x16x128xf32> to vector<256x128xf32>
    %c0_4 = arith.constant 0 : index
    %c0_5 = arith.constant 0 : index
    %c0_6 = arith.constant 0 : index
    %9 = vector.load %arg3[%c0_4, %c0_5, %c0_6] : memref<9x128x128xf32, #tpu.memory_space<vmem>>, vector<1x128x128xf32>
    %10 = vector.shape_cast %9 : vector<1x128x128xf32> to vector<128x128xf32>
    %cst = arith.constant dense<0.000000e+00> : vector<256x128xf32>
    %11 = tpu.matmul %8, %10, %cst {dimension_numbers = #tpu.dot_dimension_numbers<[1], [0], [0], [1], [0, 0, 1, 1], [], []>} : vector<256x128xf32>, vector<128x128xf32>, vector<256x128xf32> -> vector<256x128xf32>
    %c0_i32_7 = arith.constant 0 : i32
    %12 = arith.addi %3, %c0_i32_7 : i32
    %c0_8 = arith.constant 0 : index
    %13 = arith.index_cast %12 : i32 to index
    %c1 = arith.constant 1 : index
    %c0_9 = arith.constant 0 : index
    %14 = vector.load %arg2[%c0_8, %13, %c1, %c0_9] : memref<1x18x18x128xf32, #tpu.memory_space<vmem>>, vector<1x16x16x128xf32>
    %15 = vector.shape_cast %14 : vector<1x16x16x128xf32> to vector<16x16x128xf32>
    %16 = vector.shape_cast %15 : vector<16x16x128xf32> to vector<256x128xf32>
    %c1_10 = arith.constant 1 : index
    %c0_11 = arith.constant 0 : index
    %c0_12 = arith.constant 0 : index
    %17 = vector.load %arg3[%c1_10, %c0_11, %c0_12] : memref<9x128x128xf32, #tpu.memory_space<vmem>>, vector<1x128x128xf32>
    %18 = vector.shape_cast %17 : vector<1x128x128xf32> to vector<128x128xf32>
    %cst_13 = arith.constant dense<0.000000e+00> : vector<256x128xf32>
    %19 = tpu.matmul %16, %18, %cst_13 {dimension_numbers = #tpu.dot_dimension_numbers<[1], [0], [0], [1], [0, 0, 1, 1], [], []>} : vector<256x128xf32>, vector<128x128xf32>, vector<256x128xf32> -> vector<256x128xf32>
    %20 = arith.addf %11, %19 : vector<256x128xf32>
    %c0_i32_14 = arith.constant 0 : i32
    %21 = arith.addi %3, %c0_i32_14 : i32
    %c0_15 = arith.constant 0 : index
    %22 = arith.index_cast %21 : i32 to index
    %c2 = arith.constant 2 : index
    %c0_16 = arith.constant 0 : index
    %23 = vector.load %arg2[%c0_15, %22, %c2, %c0_16] : memref<1x18x18x128xf32, #tpu.memory_space<vmem>>, vector<1x16x16x128xf32>
    %24 = vector.shape_cast %23 : vector<1x16x16x128xf32> to vector<16x16x128xf32>
    %25 = vector.shape_cast %24 : vector<16x16x128xf32> to vector<256x128xf32>
    %c2_17 = arith.constant 2 : index
    %c0_18 = arith.constant 0 : index
    %c0_19 = arith.constant 0 : index
    %26 = vector.load %arg3[%c2_17, %c0_18, %c0_19] : memref<9x128x128xf32, #tpu.memory_space<vmem>>, vector<1x128x128xf32>
    %27 = vector.shape_cast %26 : vector<1x128x128xf32> to vector<128x128xf32>
    %cst_20 = arith.constant dense<0.000000e+00> : vector<256x128xf32>
    %28 = tpu.matmul %25, %27, %cst_20 {dimension_numbers = #tpu.dot_dimension_numbers<[1], [0], [0], [1], [0, 0, 1, 1], [], []>} : vector<256x128xf32>, vector<128x128xf32>, vector<256x128xf32> -> vector<256x128xf32>
    %29 = arith.addf %20, %28 : vector<256x128xf32>
    %c1_i32 = arith.constant 1 : i32
    %30 = arith.addi %3, %c1_i32 : i32
    %c0_21 = arith.constant 0 : index
    %31 = arith.index_cast %30 : i32 to index
    %c0_22 = arith.constant 0 : index
    %c0_23 = arith.constant 0 : index
    %32 = vector.load %arg2[%c0_21, %31, %c0_22, %c0_23] : memref<1x18x18x128xf32, #tpu.memory_space<vmem>>, vector<1x16x16x128xf32>
    %33 = vector.shape_cast %32 : vector<1x16x16x128xf32> to vector<16x16x128xf32>
    %34 = vector.shape_cast %33 : vector<16x16x128xf32> to vector<256x128xf32>
    %c3 = arith.constant 3 : index
    %c0_24 = arith.constant 0 : index
    %c0_25 = arith.constant 0 : index
    %35 = vector.load %arg3[%c3, %c0_24, %c0_25] : memref<9x128x128xf32, #tpu.memory_space<vmem>>, vector<1x128x128xf32>
    %36 = vector.shape_cast %35 : vector<1x128x128xf32> to vector<128x128xf32>
    %cst_26 = arith.constant dense<0.000000e+00> : vector<256x128xf32>
    %37 = tpu.matmul %34, %36, %cst_26 {dimension_numbers = #tpu.dot_dimension_numbers<[1], [0], [0], [1], [0, 0, 1, 1], [], []>} : vector<256x128xf32>, vector<128x128xf32>, vector<256x128xf32> -> vector<256x128xf32>
    %38 = arith.addf %29, %37 : vector<256x128xf32>
    %c1_i32_27 = arith.constant 1 : i32
    %39 = arith.addi %3, %c1_i32_27 : i32
    %c0_28 = arith.constant 0 : index
    %40 = arith.index_cast %39 : i32 to index
    %c1_29 = arith.constant 1 : index
    %c0_30 = arith.constant 0 : index
    %41 = vector.load %arg2[%c0_28, %40, %c1_29, %c0_30] : memref<1x18x18x128xf32, #tpu.memory_space<vmem>>, vector<1x16x16x128xf32>
    %42 = vector.shape_cast %41 : vector<1x16x16x128xf32> to vector<16x16x128xf32>
    %43 = vector.shape_cast %42 : vector<16x16x128xf32> to vector<256x128xf32>
    %c4 = arith.constant 4 : index
    %c0_31 = arith.constant 0 : index
    %c0_32 = arith.constant 0 : index
    %44 = vector.load %arg3[%c4, %c0_31, %c0_32] : memref<9x128x128xf32, #tpu.memory_space<vmem>>, vector<1x128x128xf32>
    %45 = vector.shape_cast %44 : vector<1x128x128xf32> to vector<128x128xf32>
    %cst_33 = arith.constant dense<0.000000e+00> : vector<256x128xf32>
    %46 = tpu.matmul %43, %45, %cst_33 {dimension_numbers = #tpu.dot_dimension_numbers<[1], [0], [0], [1], [0, 0, 1, 1], [], []>} : vector<256x128xf32>, vector<128x128xf32>, vector<256x128xf32> -> vector<256x128xf32>
    %47 = arith.addf %38, %46 : vector<256x128xf32>
    %c1_i32_34 = arith.constant 1 : i32
    %48 = arith.addi %3, %c1_i32_34 : i32
    %c0_35 = arith.constant 0 : index
    %49 = arith.index_cast %48 : i32 to index
    %c2_36 = arith.constant 2 : index
    %c0_37 = arith.constant 0 : index
    %50 = vector.load %arg2[%c0_35, %49, %c2_36, %c0_37] : memref<1x18x18x128xf32, #tpu.memory_space<vmem>>, vector<1x16x16x128xf32>
    %51 = vector.shape_cast %50 : vector<1x16x16x128xf32> to vector<16x16x128xf32>
    %52 = vector.shape_cast %51 : vector<16x16x128xf32> to vector<256x128xf32>
    %c5 = arith.constant 5 : index
    %c0_38 = arith.constant 0 : index
    %c0_39 = arith.constant 0 : index
    %53 = vector.load %arg3[%c5, %c0_38, %c0_39] : memref<9x128x128xf32, #tpu.memory_space<vmem>>, vector<1x128x128xf32>
    %54 = vector.shape_cast %53 : vector<1x128x128xf32> to vector<128x128xf32>
    %cst_40 = arith.constant dense<0.000000e+00> : vector<256x128xf32>
    %55 = tpu.matmul %52, %54, %cst_40 {dimension_numbers = #tpu.dot_dimension_numbers<[1], [0], [0], [1], [0, 0, 1, 1], [], []>} : vector<256x128xf32>, vector<128x128xf32>, vector<256x128xf32> -> vector<256x128xf32>
    %56 = arith.addf %47, %55 : vector<256x128xf32>
    %c2_i32 = arith.constant 2 : i32
    %57 = arith.addi %3, %c2_i32 : i32
    %c0_41 = arith.constant 0 : index
    %58 = arith.index_cast %57 : i32 to index
    %c0_42 = arith.constant 0 : index
    %c0_43 = arith.constant 0 : index
    %59 = vector.load %arg2[%c0_41, %58, %c0_42, %c0_43] : memref<1x18x18x128xf32, #tpu.memory_space<vmem>>, vector<1x16x16x128xf32>
    %60 = vector.shape_cast %59 : vector<1x16x16x128xf32> to vector<16x16x128xf32>
    %61 = vector.shape_cast %60 : vector<16x16x128xf32> to vector<256x128xf32>
    %c6 = arith.constant 6 : index
    %c0_44 = arith.constant 0 : index
    %c0_45 = arith.constant 0 : index
    %62 = vector.load %arg3[%c6, %c0_44, %c0_45] : memref<9x128x128xf32, #tpu.memory_space<vmem>>, vector<1x128x128xf32>
    %63 = vector.shape_cast %62 : vector<1x128x128xf32> to vector<128x128xf32>
    %cst_46 = arith.constant dense<0.000000e+00> : vector<256x128xf32>
    %64 = tpu.matmul %61, %63, %cst_46 {dimension_numbers = #tpu.dot_dimension_numbers<[1], [0], [0], [1], [0, 0, 1, 1], [], []>} : vector<256x128xf32>, vector<128x128xf32>, vector<256x128xf32> -> vector<256x128xf32>
    %65 = arith.addf %56, %64 : vector<256x128xf32>
    %c2_i32_47 = arith.constant 2 : i32
    %66 = arith.addi %3, %c2_i32_47 : i32
    %c0_48 = arith.constant 0 : index
    %67 = arith.index_cast %66 : i32 to index
    %c1_49 = arith.constant 1 : index
    %c0_50 = arith.constant 0 : index
    %68 = vector.load %arg2[%c0_48, %67, %c1_49, %c0_50] : memref<1x18x18x128xf32, #tpu.memory_space<vmem>>, vector<1x16x16x128xf32>
    %69 = vector.shape_cast %68 : vector<1x16x16x128xf32> to vector<16x16x128xf32>
    %70 = vector.shape_cast %69 : vector<16x16x128xf32> to vector<256x128xf32>
    %c7 = arith.constant 7 : index
    %c0_51 = arith.constant 0 : index
    %c0_52 = arith.constant 0 : index
    %71 = vector.load %arg3[%c7, %c0_51, %c0_52] : memref<9x128x128xf32, #tpu.memory_space<vmem>>, vector<1x128x128xf32>
    %72 = vector.shape_cast %71 : vector<1x128x128xf32> to vector<128x128xf32>
    %cst_53 = arith.constant dense<0.000000e+00> : vector<256x128xf32>
    %73 = tpu.matmul %70, %72, %cst_53 {dimension_numbers = #tpu.dot_dimension_numbers<[1], [0], [0], [1], [0, 0, 1, 1], [], []>} : vector<256x128xf32>, vector<128x128xf32>, vector<256x128xf32> -> vector<256x128xf32>
    %74 = arith.addf %65, %73 : vector<256x128xf32>
    %c2_i32_54 = arith.constant 2 : i32
    %75 = arith.addi %3, %c2_i32_54 : i32
    %c0_55 = arith.constant 0 : index
    %76 = arith.index_cast %75 : i32 to index
    %c2_56 = arith.constant 2 : index
    %c0_57 = arith.constant 0 : index
    %77 = vector.load %arg2[%c0_55, %76, %c2_56, %c0_57] : memref<1x18x18x128xf32, #tpu.memory_space<vmem>>, vector<1x16x16x128xf32>
    %78 = vector.shape_cast %77 : vector<1x16x16x128xf32> to vector<16x16x128xf32>
    %79 = vector.shape_cast %78 : vector<16x16x128xf32> to vector<256x128xf32>
    %c8 = arith.constant 8 : index
    %c0_58 = arith.constant 0 : index
    %c0_59 = arith.constant 0 : index
    %80 = vector.load %arg3[%c8, %c0_58, %c0_59] : memref<9x128x128xf32, #tpu.memory_space<vmem>>, vector<1x128x128xf32>
    %81 = vector.shape_cast %80 : vector<1x128x128xf32> to vector<128x128xf32>
    %cst_60 = arith.constant dense<0.000000e+00> : vector<256x128xf32>
    %82 = tpu.matmul %79, %81, %cst_60 {dimension_numbers = #tpu.dot_dimension_numbers<[1], [0], [0], [1], [0, 0, 1, 1], [], []>} : vector<256x128xf32>, vector<128x128xf32>, vector<256x128xf32> -> vector<256x128xf32>
    %83 = arith.addf %74, %82 : vector<256x128xf32>
    %cst_61 = arith.constant dense<0.000000e+00> : vector<128xf32>
    %84 = vector.multi_reduction <add>, %83, %cst_61 [0] : vector<256x128xf32> to vector<128xf32>
    %85 = vector.shape_cast %84 : vector<128xf32> to vector<1x128xf32>
    %86 = arith.mulf %83, %83 : vector<256x128xf32>
    %cst_62 = arith.constant dense<0.000000e+00> : vector<128xf32>
    %87 = vector.multi_reduction <add>, %86, %cst_62 [0] : vector<256x128xf32> to vector<128xf32>
    %88 = vector.shape_cast %87 : vector<128xf32> to vector<1x128xf32>
    %c0_63 = arith.constant 0 : index
    %c0_64 = arith.constant 0 : index
    %c0_65 = arith.constant 0 : index
    %89 = vector.load %arg4[%c0_63, %c0_64, %c0_65] : memref<1x1x128xf32, #tpu.memory_space<vmem>>, vector<1x1x128xf32>
    %90 = vector.shape_cast %85 : vector<1x128xf32> to vector<1x1x128xf32>
    %91 = arith.addf %89, %90 : vector<1x1x128xf32>
    %c0_66 = arith.constant 0 : index
    %c0_67 = arith.constant 0 : index
    %c0_68 = arith.constant 0 : index
    %92 = vector.load %arg4[%c0_66, %c0_67, %c0_68] : memref<1x1x128xf32, #tpu.memory_space<vmem>>, vector<1x1x128xf32>
    tpu.vector_store %arg4[%c0_66, %c0_67, %c0_68], %91 {strides = array<i32>} : memref<1x1x128xf32, #tpu.memory_space<vmem>>, vector<1x1x128xf32>,
    %c0_69 = arith.constant 0 : index
    %c0_70 = arith.constant 0 : index
    %c0_71 = arith.constant 0 : index
    %93 = vector.load %arg5[%c0_69, %c0_70, %c0_71] : memref<1x1x128xf32, #tpu.memory_space<vmem>>, vector<1x1x128xf32>
    %94 = vector.shape_cast %88 : vector<1x128xf32> to vector<1x1x128xf32>
    %95 = arith.addf %93, %94 : vector<1x1x128xf32>
    %c0_72 = arith.constant 0 : index
    %c0_73 = arith.constant 0 : index
    %c0_74 = arith.constant 0 : index
    %96 = vector.load %arg5[%c0_72, %c0_73, %c0_74] : memref<1x1x128xf32, #tpu.memory_space<vmem>>, vector<1x1x128xf32>
    tpu.vector_store %arg5[%c0_72, %c0_73, %c0_74], %95 {strides = array<i32>} : memref<1x1x128xf32, #tpu.memory_space<vmem>>, vector<1x1x128xf32>,
    return
  }
  func.func @transform_0(%arg0: i32, %arg1: i32) -> (i32, i32, i32, i32) {
    %c0_i32 = arith.constant 0 : i32
    %c0_i32_0 = arith.constant 0 : i32
    %c0_i32_1 = arith.constant 0 : i32
    %c0_i32_2 = arith.constant 0 : i32
    return %arg0, %c0_i32, %c0_i32_0, %c0_i32_1 : i32, i32, i32, i32
  }
  func.func @transform_1(%arg0: i32, %arg1: i32) -> (i32, i32, i32) {
    %c0_i32 = arith.constant 0 : i32
    %c0_i32_0 = arith.constant 0 : i32
    %c0_i32_1 = arith.constant 0 : i32
    %c0_i32_2 = arith.constant 0 : i32
    return %c0_i32, %c0_i32_0, %c0_i32_1 : i32, i32, i32
  }
  func.func @transform_2(%arg0: i32, %arg1: i32) -> (i32, i32, i32) {
    %c0_i32 = arith.constant 0 : i32
    %c0_i32_0 = arith.constant 0 : i32
    %c0_i32_1 = arith.constant 0 : i32
    return %arg0, %c0_i32, %c0_i32_0 : i32, i32, i32
  }
  func.func @transform_3(%arg0: i32, %arg1: i32) -> (i32, i32, i32) {
    %c0_i32 = arith.constant 0 : i32
    %c0_i32_0 = arith.constant 0 : i32
    %c0_i32_1 = arith.constant 0 : i32
    return %arg0, %c0_i32, %c0_i32_0 : i32, i32, i32
  }
}

</mosaic_0001>

<bundles_post_ra>
// kernel: tpu_custom_call.1
= control target key start
LH: loop header
LB: loop body
LE: loop exit
PB: predicated region body
PF: predicated region fallthrough
CT: control target
= control target key end

     0   :  { %9 = vsyncpa [#allocation3], 0  ;;  %s3824_s0 = inlined_call_operand.vmem [shape: f32[2,18,18,128], index: 0, kind: input, shape index: {}]   ;;  %s3825_s1 = inlined_call_operand.vmem [shape: f32[9,128,128], index: 1, kind: input, shape index: {}]   ;;  %s3826_s2 = inlined_call_operand.hbm [shape: f32[2,1,128], index: 2, kind: output, shape index: {0}]   ;;  %s3827_s3 = inlined_call_operand.hbm [shape: f32[2,1,128], index: 3, kind: output, shape index: {1}]  }
   0x1   :  { %11 = vsyncpa [#allocation3 + $0x1], 0 }
   0x2   :  { %12 = vsyncpa [#allocation5], 0 }
   0x3   :  { %14 = vsyncpa [#allocation5 + $0x1], 0  ;;  %s2700_s12 = smov 0   ;;  %s2702_s13 = smov 0  }
   0x4   :  { %s2704_s14 = smov 0   ;;  %s2706_s15 = smov 0  }
   0x5   :  { %s2708_s16 = smov 0   ;;  %s2710_s17 = smov 0  }
   0x6 LB: > { %s2129_s18 = sadd.s32 4294967295, %s2677_s17   ;;  %s2130_s19 = sadd.s32 4294967294, %s2677_s17   ;;  %s2677_s17 = sphi %s2710_s17, %s20_s17   ;;  %s2673_s16 = sphi %s2708_s16, %s3846_s16   ;;  %s2669_s15 = sphi %s2706_s15, %s3845_s15   ;;  %s2665_s14 = sphi %s2704_s14, %s3844_s14   ;;  %s2661_s13 = sphi %s2702_s13, %s3843_s13   ;;  %s2657_s12 = sphi %s2700_s12, %s3842_s12  }
   0x7   : > { %s32_s20 = sadd.s32 1, %s2673_s16  ;;  %s86_s21 = sadd.s32 1, %s2665_s14 }
   0x8   : > { %p34_p0 = scmp.ge.s32.totalorder %s32_s20, 2  ;;  %p96_p1 = scmp.ne.s32.totalorder %s2665_s14, %s2661_s13 }
   0x9   : > { %p97_p2 = scmp.eq.s32.totalorder %s2129_s18, 1  ;;  %p102_p3 = scmp.ne.s32.totalorder %s2661_s13, %s2657_s12 }
   0xa   : > { %s3848_s20 = smov (%p34_p0, %s32_s20), 0  ;;  %p103_p5 = scmp.eq.s32.totalorder %s2130_s19, 1 }
   0xb   : > { %p2740_p4 = por %p97_p2, %p96_p1  ;;  %s83_s23 = ssub.s32 %s2673_s16, %s3848_s20 }
   0xc   : > { %p2133_p6 = scmp.ge.s32.totalorder %s2677_s17, 1  ;;  %p84_p7 = scmp.eq.s32.totalorder %s83_s23, 0 }
   0xd   : > { %p2747_p8 = por %p103_p5, %p102_p3  ;;  %p158_p9 = scmp.lt.s32.totalorder %s2677_s17, 3 }
   0xe   : > { %s2753_s25 = scalar_select %p84_p7, %s2665_s14, %s86_s21  }
   0xf   : > { %p159_p10 = pnand %p2133_p6, %p158_p9 }
  0x11   : > { %162 = sbr.rel (%p159_p10) target bundleno = 791 (0x317), region = 28 }
  0x16   : > { %v2150_v0 = vld [vmem:[%s3825_s1 + $0xf8] sm:$0xff]  ;;  %v2149_v1 = vld [vmem:[%s3825_s1 + $0xf0] sm:$0xff]  ;;  %v2148_v2 = vld [vmem:[%s3825_s1 + $0xe8] sm:$0xff]  ;;  %p185_p11 = scmp.lt.s32.totalorder %s2669_s15, 1  ;;  %s2011_s6 = scalar_lea.hbm %s3826_s2, %s2669_s15 }
  0x17   : > { %2457 = vmatpush.msra.mxu1 %v2150_v0  ;;  %2458 = vmatpush.msra.mxu2 %v2150_v0  ;;  %v2147_v3 = vld [vmem:[%s3825_s1 + $0xe0] sm:$0xff]  ;;  %v2146_v4 = vld [vmem:[%s3825_s1 + $0xd8] sm:$0xff]  ;;  %v2145_v5 = vld [vmem:[%s3825_s1 + $0xd0] sm:$0xff]  ;;  %s3763_s11 = sshll.u32 %s2011_s6, 4  ;;  %s2016_s11 = int_to_ptr.hbm [resolvable:$true] %s3763_s11 }
  0x18   : > { %2459 = vmatpush.msra.mxu3 %v2150_v0  ;;  %296 = vmatpush.msra.mxu0 %v2150_v0  ;;  %v2144_v6 = vld [vmem:[%s3825_s1 + $0xc8] sm:$0xff]  ;;  %v2143_v7 = vld [vmem:[%s3825_s1 + $0xc0] sm:$0xff]  ;;  %v2142_v8 = vld [vmem:[%s3825_s1 + $0xb8] sm:$0xff]  ;;  %s186_s4 = scalar_select %p185_p11, %s2669_s15, 1 }
  0x19   : > { %2460 = vmatpush.msra.mxu1 %v2149_v1  ;;  %2461 = vmatpush.msra.mxu2 %v2149_v1  ;;  %v2141_v9 = vld [vmem:[%s3825_s1 + $0xb0] sm:$0xff]  ;;  %v2140_v10 = vld [vmem:[%s3825_s1 + $0xa8] sm:$0xff]  ;;  %v2139_v11 = vld [vmem:[%s3825_s1 + $0xa0] sm:$0xff]  ;;  %s2581_s21 = sshra.s32 %s2016_s11, 4  ;;  %s2582_s21 = int_to_ptr.hbm [resolvable:$true] %s2581_s21 }
  0x1a   : > { %2462 = vmatpush.msra.mxu3 %v2149_v1  ;;  %297 = vmatpush.msra.mxu0 %v2149_v1  ;;  %v2138_v12 = vld [vmem:[%s3825_s1 + $0x98] sm:$0xff]  ;;  %s2505_s9 = smul.u32 432, %s186_s4  ;;  %v2137_v13 = vld [vmem:[%s3825_s1 + $0x90] sm:$0xff]  ;;  %v2136_v14 = vld [vmem:[%s3825_s1 + $0x88] sm:$0xff]  ;;  %s2583_s23 = scalar_lea.hbm %s2582_s21, 1 }
  0x1b   : > { %2463 = vmatpush.msra.mxu1 %v2148_v2  ;;  %2464 = vmatpush.msra.mxu2 %v2148_v2  ;;  %v2135_v15 = vld [vmem:[%s3825_s1 + $0x80] sm:$0xff]  ;;  %v2166_v18 = vld [vmem:[%s3825_s1 + $0x178] sm:$0xff]  ;;  %v2165_v22 = vld [vmem:[%s3825_s1 + $0x170] sm:$0xff]  ;;  %p2584_p12 = scmp.ne.s32.totalorder %s2582_s21, %s2583_s23  ;;  %s2587_s4 = scalar_lea.hbm %s3826_s2, 2 }
  0x1c   : > { %2465 = vmatpush.msra.mxu3 %v2148_v2  ;;  %298 = vmatpush.msra.mxu0 %v2148_v2  ;;  %s2805_s26 = scalar_lea.vmem %s3824_s0, %s2505_s9  ;;  %v246_v20 = vld [vmem:[%s3825_s1 + $0x78] sm:$0xff]  ;;  %v245_v23 = vld [vmem:[%s3825_s1 + $0x70] sm:$0xff]  ;;  %v2164_v25 = vld [vmem:[%s3825_s1 + $0x168] sm:$0xff]  ;;  %s2024_s9 = scalar_lea.hbm %s3827_s3, %s2669_s15 }
  0x1d   : > { %2466 = vmatpush.msra.mxu1 %v2147_v3  ;;  %2467 = vmatpush.msra.mxu2 %v2147_v3  ;;  %v2811_v16 = vld [vmem:[%s2805_s26 + $0x61] sm:$0xff]  ;;  %v2214_v21 = vld [vmem:[%s3825_s1 + $0x1f8] sm:$0xff]  ;;  %v2213_v24 = vld [vmem:[%s3825_s1 + $0x1f0] sm:$0xff]  ;;  %s3767_s19 = sshll.u32 %s2024_s9, 4  ;;  %p2585_p13 = pnand %p2584_p12, %p2740_p4  ;;  %s2029_s19 = int_to_ptr.hbm [resolvable:$true] %s3767_s19 }
  0x1e   : > { %2468 = vmatpush.msra.mxu3 %v2147_v3  ;;  %299 = vmatpush.msra.mxu0 %v2147_v3  ;;  %v2814_v17 = vld [vmem:[%s2805_s26 + $0xc1] sm:$0xff]  ;;  %v2262_v29 = vld [vmem:[%s3825_s1 + $0x278] sm:$0xff]  ;;  %v2851_v30 = vld [vmem:[%s2805_s26 + $0x69] sm:$0xff]  ;;  %p2588_p1 = scmp.lt.s32.totalorder %s2582_s21, %s3826_s2  ;;  %p2589_p2 = scmp.lt.s32.totalorder %s2587_s4, %s2583_s23 }
  0x1f   : > { %2469 = vmatpush.msra.mxu1 %v2146_v4  ;;  %2470 = vmatpush.msra.mxu2 %v2146_v4  ;;  %v271_v19 = vld [vmem:[%s2805_s26 + $0x121] sm:$0xff]  ;;  %v2854_v31 = vld [vmem:[%s2805_s26 + $0xc9] sm:$0xff]  ;;  %v2162_v37 = vld [vmem:[%s3825_s1 + $0x158] sm:$0xff]  ;;  %p2586_p0 = pneg %p2585_p13 }
  0x20   : > { %2471 = vmatpush.msra.mxu3 %v2146_v4  ;;  %300 = vmatpush.msra.mxu0 %v2146_v4  ;;  %v247_v26 = vld [vmem:[%s2805_s26 + $0x1] sm:$0xff]  ;;  %v272_v34 = vld [vmem:[%s2805_s26 + $0x129] sm:$0xff]  ;;  %v2210_v38 = vld [vmem:[%s3825_s1 + $0x1d8] sm:$0xff]  ;;  %p2590_p3 = por %p2589_p2, %p2588_p1 }
  0x21   : > { %2472 = vmatpush.msra.mxu1 %v2145_v5  ;;  %2473 = vmatpush.msra.mxu2 %v2145_v5  ;;  %v244_v27 = vld [vmem:[%s3825_s1 + $0x68] sm:$0xff]  ;;  %v2163_v32 = vld [vmem:[%s3825_s1 + $0x160] sm:$0xff]  ;;  %v2261_v35 = vld [vmem:[%s3825_s1 + $0x270] sm:$0xff] }
  0x22   : > { %2474 = vmatpush.msra.mxu3 %v2145_v5  ;;  %301 = vmatpush.msra.mxu0 %v2145_v5  ;;  %v2212_v28 = vld [vmem:[%s3825_s1 + $0x1e8] sm:$0xff]  ;;  %v2211_v33 = vld [vmem:[%s3825_s1 + $0x1e0] sm:$0xff]  ;;  %v242_v40 = vld [vmem:[%s3825_s1 + $0x58] sm:$0xff]  ;;  %p2591_p5 = pnand %p2590_p3, %p2586_p0 }
  0x23   : > { %2475 = vmatpush.msra.mxu1 %v2144_v6  ;;  %2476 = vmatpush.msra.mxu2 %v2144_v6  ;;  %v243_v36 = vld [vmem:[%s3825_s1 + $0x60] sm:$0xff]  ;;  %v2260_v39 = vld [vmem:[%s3825_s1 + $0x268] sm:$0xff]  ;;  %v2161_v41 = vld [vmem:[%s3825_s1 + $0x150] sm:$0xff] }
  0x24   : > { %2477 = vmatpush.msra.mxu3 %v2144_v6  ;;  %302 = vmatpush.msra.mxu0 %v2144_v6  ;;  %v248_v42 = vld [vmem:[%s2805_s26 + $0x9] sm:$0xff]  ;;  %v2259_v44 = vld [vmem:[%s3825_s1 + $0x260] sm:$0xff]  ;;  %v2258_v51 = vld [vmem:[%s3825_s1 + $0x258] sm:$0xff] }
  0x25   : > { %2478 = vmatpush.msra.mxu1 %v2143_v7  ;;  %2479 = vmatpush.msra.mxu2 %v2143_v7  ;;  %v2209_v43 = vld [vmem:[%s3825_s1 + $0x1d0] sm:$0xff]  ;;  %v2897_v46 = vld [vmem:[%s2805_s26 + $0x79] sm:$0xff]  ;;  %v2160_v48 = vld [vmem:[%s3825_s1 + $0x148] sm:$0xff] }
  0x26   : > { %2480 = vmatpush.msra.mxu3 %v2143_v7  ;;  %303 = vmatpush.msra.mxu0 %v2143_v7  ;;  %v241_v45 = vld [vmem:[%s3825_s1 + $0x50] sm:$0xff]  ;;  %v2900_v47 = vld [vmem:[%s2805_s26 + $0xd9] sm:$0xff]  ;;  %v2208_v49 = vld [vmem:[%s3825_s1 + $0x1c8] sm:$0xff] }
  0x27   : > { %2481 = vmatpush.msra.mxu1 %v2142_v8  ;;  %2482 = vmatpush.msra.mxu2 %v2142_v8  ;;  %v273_v50 = vld [vmem:[%s2805_s26 + $0x139] sm:$0xff]  ;;  %v240_v52 = vld [vmem:[%s3825_s1 + $0x48] sm:$0xff]  ;;  %v2257_v55 = vld [vmem:[%s3825_s1 + $0x250] sm:$0xff] }
  0x28   : > { %2483 = vmatpush.msra.mxu3 %v2142_v8  ;;  %304 = vmatpush.msra.mxu0 %v2142_v8  ;;  %v2159_v53 = vld [vmem:[%s3825_s1 + $0x140] sm:$0xff]  ;;  %v2158_v57 = vld [vmem:[%s3825_s1 + $0x138] sm:$0xff]  ;;  %v2256_v60 = vld [vmem:[%s3825_s1 + $0x248] sm:$0xff] }
  0x29   : > { %2484 = vmatpush.msra.mxu1 %v2141_v9  ;;  %2485 = vmatpush.msra.mxu2 %v2141_v9  ;;  %v2207_v54 = vld [vmem:[%s3825_s1 + $0x1c0] sm:$0xff]  ;;  %v2206_v59 = vld [vmem:[%s3825_s1 + $0x1b8] sm:$0xff]  ;;  %v2157_v0 = vld [vmem:[%s3825_s1 + $0x130] sm:$0xff] }
  0x2a   : > { %2486 = vmatpush.msra.mxu3 %v2141_v9  ;;  %305 = vmatpush.msra.mxu0 %v2141_v9  ;;  %v239_v56 = vld [vmem:[%s3825_s1 + $0x40] sm:$0xff]  ;;  %v238_v61 = vld [vmem:[%s3825_s1 + $0x38] sm:$0xff]  ;;  %v2205_v1 = vld [vmem:[%s3825_s1 + $0x1b0] sm:$0xff] }
  0x2b   : > { %2487 = vmatpush.msra.mxu1 %v2140_v10  ;;  %2488 = vmatpush.msra.mxu2 %v2140_v10  ;;  %v2933_v58 = vld [vmem:[%s2805_s26 + $0x19] sm:$0xff]  ;;  %v2945_v62 = vld [vmem:[%s2805_s26 + $0x81] sm:$0xff]  ;;  %v237_v4 = vld [vmem:[%s3825_s1 + $0x30] sm:$0xff] }
  0x2c   : > { %2489 = vmatpush.msra.mxu3 %v2140_v10  ;;  %306 = vmatpush.msra.mxu0 %v2140_v10  ;;  %v2948_v63 = vld [vmem:[%s2805_s26 + $0xe1] sm:$0xff]  ;;  %v2254_v7 = vld [vmem:[%s3825_s1 + $0x238] sm:$0xff] }
  0x2d   : > { %2490 = vmatpush.msra.mxu1 %v2139_v11  ;;  %2491 = vmatpush.msra.mxu2 %v2139_v11  ;;  %v274_v2 = vld [vmem:[%s2805_s26 + $0x141] sm:$0xff] }
  0x2e   : > { %2492 = vmatpush.msra.mxu3 %v2139_v11  ;;  %307 = vmatpush.msra.mxu0 %v2139_v11  ;;  %v2255_v3 = vld [vmem:[%s3825_s1 + $0x240] sm:$0xff]  ;;  %v2156_v5 = vld [vmem:[%s3825_s1 + $0x128] sm:$0xff] }
  0x2f   : > { %2493 = vmatpush.msra.mxu1 %v2138_v12  ;;  %2494 = vmatpush.msra.mxu2 %v2138_v12  ;;  %v2204_v6 = vld [vmem:[%s3825_s1 + $0x1a8] sm:$0xff]  ;;  %v2155_v9 = vld [vmem:[%s3825_s1 + $0x120] sm:$0xff] }
  0x30   : > { %2495 = vmatpush.msra.mxu3 %v2138_v12  ;;  %308 = vmatpush.msra.mxu0 %v2138_v12  ;;  %v236_v8 = vld [vmem:[%s3825_s1 + $0x28] sm:$0xff]  ;;  %v2203_v11 = vld [vmem:[%s3825_s1 + $0x1a0] sm:$0xff]  ;;  %v2253_v12 = vld [vmem:[%s3825_s1 + $0x230] sm:$0xff] }
  0x31   : > { %2496 = vmatpush.msra.mxu1 %v2137_v13  ;;  %2497 = vmatpush.msra.mxu2 %v2137_v13  ;;  %v2982_v10 = vld [vmem:[%s2805_s26 + $0x21] sm:$0xff] }
  0x32   : > { %2498 = vmatpush.msra.mxu3 %v2137_v13  ;;  %309 = vmatpush.msra.mxu0 %v2137_v13  ;;  %v235_v13 = vld [vmem:[%s3825_s1 + $0x20] sm:$0xff] }
  0x33   : > { %2499 = vmatpush.msra.mxu1 %v2136_v14  ;;  %2500 = vmatpush.msra.mxu2 %v2136_v14 }
  0x34   : > { %2501 = vmatpush.msra.mxu3 %v2136_v14  ;;  %310 = vmatpush.msra.mxu0 %v2136_v14  ;;  %v2994_v14 = vld [vmem:[%s2805_s26 + $0x91] sm:$0xff] }
  0x35   : > { %2502 = vmatpush.msra.mxu1 %v2135_v15  ;;  %2503 = vmatpush.msra.mxu2 %v2135_v15 }
  0x36   : > { %336 = vmatmul.f32.vlgmr.msra.gmra.mxu1 %v2811_v16  ;;  %360 = vmatmul.f32.vlgmr.msra.gmra.mxu2 %v2814_v17 }
  0x37   : > { %571 = vmatpush.msrb.mxu2 %v2166_v18  ;;  %2504 = vmatpush.msra.mxu3 %v2135_v15  ;;  %v2154_v18 = vld [vmem:[%s3825_s1 + $0x118] sm:$0xff] }
  0x38   : > { %384 = vmatmul.f32.vlgmr.msra.gmra.mxu3 %v271_v19  ;;  %409 = vmatpush.msrb.mxu1 %v246_v20  ;;  %v2202_v19 = vld [vmem:[%s3825_s1 + $0x198] sm:$0xff] }
  0x39   : > { %768 = vmatpush.msrb.mxu3 %v2214_v21  ;;  %572 = vmatpush.msrb.mxu2 %v2165_v22  ;;  %v275_v20 = vld [vmem:[%s2805_s26 + $0x151] sm:$0xff]  ;;  %v2252_v21 = vld [vmem:[%s3825_s1 + $0x228] sm:$0xff] }
  0x3a   : > { %410 = vmatpush.msrb.mxu1 %v245_v23  ;;  %311 = vmatpush.msra.mxu0 %v2135_v15  ;;  %v2997_v15 = vld [vmem:[%s2805_s26 + $0xf1] sm:$0xff] }
  0x3b   : > { %769 = vmatpush.msrb.mxu3 %v2213_v24  ;;  %573 = vmatpush.msrb.mxu2 %v2164_v25  ;;  %v234_v22 = vld [vmem:[%s3825_s1 + $0x18] sm:$0xff]  ;;  %v2153_v23 = vld [vmem:[%s3825_s1 + $0x110] sm:$0xff]  ;;  %v2251_v25 = vld [vmem:[%s3825_s1 + $0x220] sm:$0xff] }
  0x3c   : > { %312 = vmatmul.f32.vlgmr.msra.gmra.mxu0 %v247_v26  ;;  %411 = vmatpush.msrb.mxu1 %v244_v27  ;;  %v2201_v24 = vld [vmem:[%s3825_s1 + $0x190] sm:$0xff]  ;;  %v2152_v27 = vld [vmem:[%s3825_s1 + $0x108] sm:$0xff] }
  0x3d   : > { %770 = vmatpush.msrb.mxu3 %v2212_v28  ;;  %962 = vmatpush.msrb.mxu0 %v2262_v29  ;;  %v233_v26 = vld [vmem:[%s3825_s1 + $0x10] sm:$0xff]  ;;  %v2200_v29 = vld [vmem:[%s3825_s1 + $0x188] sm:$0xff] }
  0x3e   : > { %339 = vmatmul.f32.gmra.mxu1 %v2851_v30  ;;  %363 = vmatmul.f32.gmra.mxu2 %v2854_v31  ;;  %v3031_v28 = vld [vmem:[%s2805_s26 + $0x31] sm:$0xff] }
  0x3f   : > { %574 = vmatpush.msrb.mxu2 %v2163_v32  ;;  %771 = vmatpush.msrb.mxu3 %v2211_v33  ;;  %v2250_v32 = vld [vmem:[%s3825_s1 + $0x218] sm:$0xff]  ;;  %v232_v33 = vld [vmem:[%s3825_s1 + $0x8] sm:$0xff] }
  0x40   : > { %387 = vmatmul.f32.gmra.mxu3 %v272_v34  ;;  %963 = vmatpush.msrb.mxu0 %v2261_v35  ;;  %v3043_v34 = vld [vmem:[%s2805_s26 + $0x99] sm:$0xff] }
  0x41   : > { %412 = vmatpush.msrb.mxu1 %v243_v36  ;;  %575 = vmatpush.msrb.mxu2 %v2162_v37  ;;  %v3046_v35 = vld [vmem:[%s2805_s26 + $0xf9] sm:$0xff] }
  0x42   : > { %772 = vmatpush.msrb.mxu3 %v2210_v38  ;;  %964 = vmatpush.msrb.mxu0 %v2260_v39  ;;  %v2151_v36 = vld [vmem:[%s3825_s1 + $0x100] sm:$0xff]  ;;  %v2249_v39 = vld [vmem:[%s3825_s1 + $0x210] sm:$0xff] }
  0x43   : > { %413 = vmatpush.msrb.mxu1 %v242_v40  ;;  %576 = vmatpush.msrb.mxu2 %v2161_v41  ;;  %v2199_v37 = vld [vmem:[%s3825_s1 + $0x180] sm:$0xff]  ;;  %v2358_v41 = vld [vmem:[%s3825_s1 + $0x378] sm:$0xff] }
  0x44   : > { %315 = vmatmul.f32.gmra.mxu0 %v248_v42  ;;  %773 = vmatpush.msrb.mxu3 %v2209_v43  ;;  %v276_v38 = vld [vmem:[%s2805_s26 + $0x159] sm:$0xff]  ;;  %v2248_v42 = vld [vmem:[%s3825_s1 + $0x208] sm:$0xff] }
  0x45   : > { %965 = vmatpush.msrb.mxu0 %v2259_v44  ;;  %414 = vmatpush.msrb.mxu1 %v241_v45  ;;  %v231_v40 = vld [vmem:[%s3825_s1] sm:$0xff]  ;;  %v2406_v43 = vld [vmem:[%s3825_s1 + $0x3f8] sm:$0xff] }
  0x46   : > { %342 = vmatmul.f32.gmra.mxu1 %v2897_v46  ;;  %366 = vmatmul.f32.gmra.mxu2 %v2900_v47  ;;  %v2310_v44 = vld [vmem:[%s3825_s1 + $0x2f8] sm:$0xff] }
  0x47   : > { %577 = vmatpush.msrb.mxu2 %v2160_v48  ;;  %774 = vmatpush.msrb.mxu3 %v2208_v49  ;;  %v3077_v45 = vld [vmem:[%s2805_s26 + $0x39] sm:$0xff]  ;;  %v3083_v49 = vld [vmem:[%s2805_s26 + $0xa9] sm:$0xff] }
  0x48   : > { %390 = vmatmul.f32.gmra.mxu3 %v273_v50  ;;  %966 = vmatpush.msrb.mxu0 %v2258_v51  ;;  %v2247_v48 = vld [vmem:[%s3825_s1 + $0x200] sm:$0xff]  ;;  %v3086_v50 = vld [vmem:[%s2805_s26 + $0x109] sm:$0xff]  ;;  %v2454_v51 = vld [vmem:[%s3825_s1 + $0x478] sm:$0xff] }
  0x49   : > { %415 = vmatpush.msrb.mxu1 %v240_v52  ;;  %578 = vmatpush.msrb.mxu2 %v2159_v53  ;;  %v277_v52 = vld [vmem:[%s2805_s26 + $0x169] sm:$0xff] }
  0x4a   : > { %775 = vmatpush.msrb.mxu3 %v2207_v54  ;;  %967 = vmatpush.msrb.mxu0 %v2257_v55  ;;  %v2357_v53 = vld [vmem:[%s3825_s1 + $0x370] sm:$0xff] }
  0x4b   : > { %416 = vmatpush.msrb.mxu1 %v239_v56  ;;  %579 = vmatpush.msrb.mxu2 %v2158_v57  ;;  %v2405_v54 = vld [vmem:[%s3825_s1 + $0x3f0] sm:$0xff] }
  0x4c   : > { %318 = vmatmul.f32.gmra.mxu0 %v2933_v58  ;;  %776 = vmatpush.msrb.mxu3 %v2206_v59  ;;  %v2309_v55 = vld [vmem:[%s3825_s1 + $0x2f0] sm:$0xff] }
  0x4d   : > { %968 = vmatpush.msrb.mxu0 %v2256_v60  ;;  %417 = vmatpush.msrb.mxu1 %v238_v61  ;;  %v3105_v56 = vld [vmem:[%s2805_s26 + $0x49] sm:$0xff]  ;;  %v3108_v57 = vld [vmem:[%s2805_s26 + $0xb1] sm:$0xff] }
  0x4e   : > { %345 = vmatmul.f32.gmra.mxu1 %v2945_v62  ;;  %369 = vmatmul.f32.gmra.mxu2 %v2948_v63  ;;  %v3111_v59 = vld [vmem:[%s2805_s26 + $0x111] sm:$0xff] }
  0x4f   : > { %580 = vmatpush.msrb.mxu2 %v2157_v0  ;;  %777 = vmatpush.msrb.mxu3 %v2205_v1  ;;  %v278_v60 = vld [vmem:[%s2805_s26 + $0x171] sm:$0xff]  ;;  %v199_v1 = vld [vmem:[%s2805_s26] sm:$0xff] }
  0x50   : > { %393 = vmatmul.f32.gmra.mxu3 %v274_v2  ;;  %969 = vmatpush.msrb.mxu0 %v2255_v3  ;;  %v2453_v61 = vld [vmem:[%s3825_s1 + $0x470] sm:$0xff]  ;;  %v522_v2 = vld [vmem:[%s2805_s26 + $0x2] sm:$0xff]  ;;  %v2167_v3 = vld [vmem:[%s2805_s26 + $0x18] sm:$0xff] }
  0x51   : > { %418 = vmatpush.msrb.mxu1 %v237_v4  ;;  %581 = vmatpush.msrb.mxu2 %v2156_v5  ;;  %v3121_v0 = vld [vmem:[%s2805_s26 + $0x51] sm:$0xff]  ;;  %v2356_v4 = vld [vmem:[%s3825_s1 + $0x368] sm:$0xff] }
  0x52   : > { %778 = vmatpush.msrb.mxu3 %v2204_v6  ;;  %970 = vmatpush.msrb.mxu0 %v2254_v7  ;;  %v2404_v5 = vld [vmem:[%s3825_s1 + $0x3e8] sm:$0xff] }
  0x53   : > { %419 = vmatpush.msrb.mxu1 %v236_v8  ;;  %582 = vmatpush.msrb.mxu2 %v2155_v9  ;;  %v2308_v6 = vld [vmem:[%s3825_s1 + $0x2e8] sm:$0xff]  ;;  %v2168_v9 = vld [vmem:[%s2805_s26 + $0x20] sm:$0xff] }
  0x54   : > { %321 = vmatmul.f32.gmra.mxu0 %v2982_v10  ;;  %779 = vmatpush.msrb.mxu3 %v2203_v11  ;;  %v200_v7 = vld [vmem:[%s2805_s26 + $0x8] sm:$0xff] }
  0x55   : > { %971 = vmatpush.msrb.mxu0 %v2253_v12  ;;  %420 = vmatpush.msrb.mxu1 %v235_v13  ;;  %v523_v8 = vld [vmem:[%s2805_s26 + $0xa] sm:$0xff]  ;;  %v524_v12 = vld [vmem:[%s2805_s26 + $0x1a] sm:$0xff] }
  0x56   : > { %348 = vmatmul.f32.gmra.mxu1 %v2994_v14  ;;  %372 = vmatmul.f32.gmra.mxu2 %v2997_v15  ;;  %v2452_v11 = vld [vmem:[%s3825_s1 + $0x468] sm:$0xff]  ;;  %v2169_v13 = vld [vmem:[%s2805_s26 + $0x30] sm:$0xff] }
  0x57   : > { %583 = vmatpush.msrb.mxu2 %v2154_v18  ;;  %780 = vmatpush.msrb.mxu3 %v2202_v19  ;;  %v2403_v18 = vld [vmem:[%s3825_s1 + $0x3e0] sm:$0xff] }
  0x58   : > { %396 = vmatmul.f32.gmra.mxu3 %v275_v20  ;;  %972 = vmatpush.msrb.mxu0 %v2252_v21  ;;  %v2307_v19 = vld [vmem:[%s3825_s1 + $0x2e0] sm:$0xff]  ;;  %v2170_v20 = vld [vmem:[%s2805_s26 + $0x38] sm:$0xff] }
  0x59   : > { %421 = vmatpush.msrb.mxu1 %v234_v22  ;;  %584 = vmatpush.msrb.mxu2 %v2153_v23  ;;  %v2451_v21 = vld [vmem:[%s3825_s1 + $0x460] sm:$0xff]  ;;  %v526_v22 = vld [vmem:[%s2805_s26 + $0x32] sm:$0xff]  ;;  %v2171_v23 = vld [vmem:[%s2805_s26 + $0x48] sm:$0xff] }
  0x5a   : > { %781 = vmatpush.msrb.mxu3 %v2201_v24  ;;  %973 = vmatpush.msrb.mxu0 %v2251_v25  ;;  %v2354_v24 = vld [vmem:[%s3825_s1 + $0x358] sm:$0xff] }
  0x5b   : > { %422 = vmatpush.msrb.mxu1 %v233_v26  ;;  %585 = vmatpush.msrb.mxu2 %v2152_v27  ;;  %v2402_v25 = vld [vmem:[%s3825_s1 + $0x3d8] sm:$0xff] }
  0x5c   : > { %324 = vmatmul.f32.gmra.mxu0 %v3031_v28  ;;  %782 = vmatpush.msrb.mxu3 %v2200_v29  ;;  %v2306_v26 = vld [vmem:[%s3825_s1 + $0x2d8] sm:$0xff] }
  0x5d   : > { %974 = vmatpush.msrb.mxu0 %v2250_v32  ;;  %423 = vmatpush.msrb.mxu1 %v232_v33  ;;  %v527_v27 = vld [vmem:[%s2805_s26 + $0x3a] sm:$0xff]  ;;  %v528_v32 = vld [vmem:[%s2805_s26 + $0x4a] sm:$0xff] }
  0x5e   : > { %351 = vmatmul.f32.gmra.mxu1 %v3043_v34  ;;  %375 = vmatmul.f32.gmra.mxu2 %v3046_v35  ;;  %v2450_v29 = vld [vmem:[%s3825_s1 + $0x458] sm:$0xff]  ;;  %v2173_v33 = vld [vmem:[%s2805_s26 + $0x60] sm:$0xff] }
  0x5f   : > { %586 = vmatpush.msrb.mxu2 %v2151_v36  ;;  %783 = vmatpush.msrb.mxu3 %v2199_v37  ;;  %v2353_v36 = vld [vmem:[%s3825_s1 + $0x350] sm:$0xff] }
  0x60   : > { %399 = vmatmul.f32.gmra.mxu3 %v276_v38  ;;  %975 = vmatpush.msrb.mxu0 %v2249_v39  ;;  %v2401_v37 = vld [vmem:[%s3825_s1 + $0x3d0] sm:$0xff] }
  0x61   : > { %424 = vmatpush.msrb.mxu1 %v231_v40  ;;  %1353 = vmatpush.msra.mxu2 %v2358_v41  ;;  %v2305_v38 = vld [vmem:[%s3825_s1 + $0x2d0] sm:$0xff]  ;;  %v2174_v40 = vld [vmem:[%s2805_s26 + $0x68] sm:$0xff] }
  0x62   : > { %976 = vmatpush.msrb.mxu0 %v2248_v42  ;;  %1547 = vmatpush.msra.mxu3 %v2406_v43  ;;  %v529_v39 = vld [vmem:[%s2805_s26 + $0x52] sm:$0xff]  ;;  %v530_v43 = vld [vmem:[%s2805_s26 + $0x62] sm:$0xff] }
  0x63   : > { %1156 = vmatpush.msra.mxu1 %v2310_v44  ;;  %1354 = vmatpush.msra.mxu2 %v2357_v53  ;;  %v2449_v41 = vld [vmem:[%s3825_s1 + $0x450] sm:$0xff]  ;;  %v2175_v44 = vld [vmem:[%s2805_s26 + $0x78] sm:$0xff] }
  0x64   : > { %327 = vmatmul.f32.gmra.mxu0 %v3077_v45  ;;  %1548 = vmatpush.msra.mxu3 %v2405_v54  ;;  %v531_v54 = vld [vmem:[%s2805_s26 + $0x6a] sm:$0xff] }
  0x65   : > { %977 = vmatpush.msrb.mxu0 %v2247_v48  ;;  %1157 = vmatpush.msra.mxu1 %v2309_v55  ;;  %v2176_v55 = vld [vmem:[%s2805_s26 + $0x80] sm:$0xff] }
  0x66   : > { %354 = vmatmul.f32.gmra.mxu1 %v3083_v49  ;;  %378 = vmatmul.f32.gmra.mxu2 %v3086_v50 }
  0x67   : > { %1741 = vmatpush.msra.mxu0 %v2454_v51  ;;  %1355 = vmatpush.msra.mxu2 %v2356_v4  ;;  %v2399_v4 = vld [vmem:[%s3825_s1 + $0x3c0] sm:$0xff] }
  0x68   : > { %402 = vmatmul.f32.gmra.mxu3 %v277_v52  ;;  %1158 = vmatpush.msra.mxu1 %v2308_v6 }
  0x69   : > { %1742 = vmatpush.msra.mxu0 %v2453_v61  ;;  %1549 = vmatpush.msra.mxu3 %v2404_v5 }
  0x6a   : > { %1159 = vmatpush.msra.mxu1 %v2307_v19 }
  0x6b   : > { %1743 = vmatpush.msra.mxu0 %v2452_v11  ;;  %1550 = vmatpush.msra.mxu3 %v2403_v18  ;;  %v2178_v11 = vld [vmem:[%s2805_s26 + $0x98] sm:$0xff] }
  0x6c   : > { %330 = vmatmul.f32.gmra.mxu0 %v3105_v56  ;;  %1160 = vmatpush.msra.mxu1 %v2306_v26  ;;  %v535_v26 = vld [vmem:[%s2805_s26 + $0x9a] sm:$0xff] }
  0x6d   : > { %1744 = vmatpush.msra.mxu0 %v2451_v21  ;;  %1551 = vmatpush.msra.mxu3 %v2402_v25  ;;  %v2398_v21 = vld [vmem:[%s3825_s1 + $0x3b8] sm:$0xff] }
  0x6e   : > { %357 = vmatmul.f32.gmra.mxu1 %v3108_v57  ;;  %381 = vmatmul.f32.gmra.mxu2 %v3111_v59 }
  0x6f   : > { %1745 = vmatpush.msra.mxu0 %v2450_v29  ;;  %1552 = vmatpush.msra.mxu3 %v2401_v37  ;;  %v536_v37 = vld [vmem:[%s2805_s26 + $0xaa] sm:$0xff] }
  0x70   : > { %405 = vmatmul.f32.gmra.mxu3 %v278_v60  ;;  %1161 = vmatpush.msra.mxu1 %v2305_v38  ;;  %v2349_v38 = vld [vmem:[%s3825_s1 + $0x330] sm:$0xff] }
  0x71   : > { %1746 = vmatpush.msra.mxu0 %v2449_v41 }
  0x74   : > { %333 = vmatmul.f32.gmra.mxu0 %v3121_v0 }
  0x76   : > { %425 = vmatmul.f32.vlgmr.msrb.gmra.mxu1 %v199_v1  ;;  %587 = vmatmul.f32.vlgmr.msrb.gmra.mxu2 %v522_v2  ;;  %v532_v2 = vld [vmem:[%s2805_s26 + $0x7a] sm:$0xff] }
  0x78   : > { %784 = vmatmul.f32.vlgmr.msrb.gmra.mxu3 %v2167_v3 }
  0x7c   : > { %978 = vmatmul.f32.vlgmr.msrb.gmra.mxu0 %v2933_v58  ;;  %v2355_v58 = vld [vmem:[%s3825_s1 + $0x360] sm:$0xff] }
  0x7d   : > { %1356 = vmatpush.msra.mxu2 %v2355_v58 }
  0x7e   : > { %428 = vmatmul.f32.gmra.mxu1 %v200_v7  ;;  %590 = vmatmul.f32.gmra.mxu2 %v523_v8 }
  0x7f   : > { %1357 = vmatpush.msra.mxu2 %v2354_v24 }
  0x80   : > { %787 = vmatmul.f32.gmra.mxu3 %v2168_v9 }
  0x81   : > { %1358 = vmatpush.msra.mxu2 %v2353_v36 }
  0x84   : > { %981 = vmatmul.f32.gmra.mxu0 %v2982_v10  ;;  %v525_v10 = vld [vmem:[%s2805_s26 + $0x22] sm:$0xff] }
  0x86   : > { %431 = vmatmul.f32.gmra.mxu1 %v2167_v3  ;;  %593 = vmatmul.f32.gmra.mxu2 %v524_v12  ;;  %v2351_v3 = vld [vmem:[%s3825_s1 + $0x340] sm:$0xff] }
  0x87   : > { %v2447_v12 = vld [vmem:[%s3825_s1 + $0x440] sm:$0xff] }
  0x88   : > { %790 = vmatmul.f32.gmra.mxu3 %v2169_v13 }
  0x8c   : > { %984 = vmatmul.f32.gmra.mxu0 %v3031_v28  ;;  %v2172_v28 = vld [vmem:[%s2805_s26 + $0x50] sm:$0xff] }
  0x8e   : > { %434 = vmatmul.f32.gmra.mxu1 %v2168_v9  ;;  %596 = vmatmul.f32.gmra.mxu2 %v525_v10  ;;  %v533_v9 = vld [vmem:[%s2805_s26 + $0x82] sm:$0xff]  ;;  %v534_v10 = vld [vmem:[%s2805_s26 + $0x92] sm:$0xff] }
  0x90   : > { %793 = vmatmul.f32.gmra.mxu3 %v2170_v20 }
  0x94   : > { %987 = vmatmul.f32.gmra.mxu0 %v3077_v45  ;;  %v2400_v45 = vld [vmem:[%s3825_s1 + $0x3c8] sm:$0xff] }
  0x95   : > { %1553 = vmatpush.msra.mxu3 %v2400_v45  ;;  %v2182_v45 = vld [vmem:[%s2805_s26 + $0xc8] sm:$0xff] }
  0x96   : > { %437 = vmatmul.f32.gmra.mxu1 %v2169_v13  ;;  %599 = vmatmul.f32.gmra.mxu2 %v526_v22 }
  0x97   : > { %1554 = vmatpush.msra.mxu3 %v2399_v4 }
  0x98   : > { %796 = vmatmul.f32.gmra.mxu3 %v2171_v23 }
  0x99   : > { %1555 = vmatpush.msra.mxu3 %v2398_v21 }
  0x9c   : > { %990 = vmatmul.f32.gmra.mxu0 %v3105_v56  ;;  %v2448_v56 = vld [vmem:[%s3825_s1 + $0x448] sm:$0xff] }
  0x9d   : > { %1747 = vmatpush.msra.mxu0 %v2448_v56 }
  0x9e   : > { %440 = vmatmul.f32.gmra.mxu1 %v2170_v20  ;;  %602 = vmatmul.f32.gmra.mxu2 %v527_v27  ;;  %v2350_v20 = vld [vmem:[%s3825_s1 + $0x338] sm:$0xff]  ;;  %v2180_v27 = vld [vmem:[%s2805_s26 + $0xb0] sm:$0xff] }
  0x9f   : > { %1748 = vmatpush.msra.mxu0 %v2447_v12  ;;  %v2300_v12 = vld [vmem:[%s3825_s1 + $0x2a8] sm:$0xff] }
  0xa0   : > { %799 = vmatmul.f32.gmra.mxu3 %v2172_v28 }
  0xa4   : > { %993 = vmatmul.f32.gmra.mxu0 %v3121_v0 }
  0xa6   : > { %443 = vmatmul.f32.gmra.mxu1 %v2171_v23  ;;  %605 = vmatmul.f32.gmra.mxu2 %v528_v32 }
  0xa8   : > { %802 = vmatmul.f32.gmra.mxu3 %v2173_v33 }
  0xac   : > { %996 = vmatmul.f32.gmra.mxu0 %v2811_v16  ;;  %v2352_v16 = vld [vmem:[%s3825_s1 + $0x348] sm:$0xff] }
  0xad   : > { %1359 = vmatpush.msra.mxu2 %v2352_v16  ;;  %v537_v16 = vld [vmem:[%s2805_s26 + $0xb2] sm:$0xff] }
  0xae   : > { %446 = vmatmul.f32.gmra.mxu1 %v2172_v28  ;;  %608 = vmatmul.f32.gmra.mxu2 %v529_v39  ;;  %v2446_v28 = vld [vmem:[%s3825_s1 + $0x438] sm:$0xff]  ;;  %v2397_v39 = vld [vmem:[%s3825_s1 + $0x3b0] sm:$0xff] }
  0xaf   : > { %1360 = vmatpush.msra.mxu2 %v2351_v3  ;;  %1749 = vmatpush.msra.mxu0 %v2446_v28  ;;  %v2348_v3 = vld [vmem:[%s3825_s1 + $0x328] sm:$0xff] }
  0xb0   : > { %805 = vmatmul.f32.gmra.mxu3 %v2174_v40 }
  0xb1   : > { %1361 = vmatpush.msra.mxu2 %v2350_v20  ;;  %1556 = vmatpush.msra.mxu3 %v2397_v39  ;;  %v539_v20 = vld [vmem:[%s2805_s26 + $0xca] sm:$0xff] }
  0xb3   : > { %v3197_v42 = vpop.f32.mrf.mxu1  ;;  %1362 = vmatpush.msra.mxu2 %v2349_v38 }
  0xb4   : > { %999 = vmatmul.f32.gmra.mxu0 %v2851_v30  ;;  %v2304_v30 = vld [vmem:[%s3825_s1 + $0x2c8] sm:$0xff] }
  0xb5   : > { %1162 = vmatpush.msra.mxu1 %v2304_v30  ;;  %v2445_v30 = vld [vmem:[%s3825_s1 + $0x430] sm:$0xff]  ;;  %1363 = vmatpush.msra.mxu2 %v2348_v3 }
  0xb6   : > { %449 = vmatmul.f32.gmra.mxu1 %v2173_v33  ;;  %611 = vmatmul.f32.gmra.mxu2 %v530_v43 }
  0xb7   : > { %1750 = vmatpush.msra.mxu0 %v2445_v30 }
  0xb8   : > { %808 = vmatmul.f32.gmra.mxu3 %v2175_v44 }
  0xb9   : > { %v3208_v48 = vpop.f32.mrf.mxu2  ;;  %v3210_v51 = vpop.f32.mrf.mxu0 }
  0xbb   : > { %v3215_v52 = vpop.f32.mrf.mxu1  ;;  %v3217_v53 = vpop.f32.mrf.mxu3 }
  0xbc   : > { %1002 = vmatmul.f32.gmra.mxu0 %v2897_v46  ;;  %v2177_v46 = vld [vmem:[%s2805_s26 + $0x90] sm:$0xff] }
  0xbe   : > { %452 = vmatmul.f32.gmra.mxu1 %v2174_v40  ;;  %614 = vmatmul.f32.gmra.mxu2 %v531_v54 }
  0xc0   : > { %811 = vmatmul.f32.gmra.mxu3 %v2176_v55 }
  0xc1   : > { %v3225_v60 = vpop.f32.mrf.mxu2  ;;  %v3227_v61 = vpop.f32.mrf.mxu0 }
  0xc3   : > { %v3229_v0 = vpop.f32.mrf.mxu1  ;;  %v3231_v1 = vpop.f32.mrf.mxu3 }
  0xc4   : > { %1005 = vmatmul.f32.gmra.mxu0 %v2945_v62  ;;  %v2303_v62 = vld [vmem:[%s3825_s1 + $0x2c0] sm:$0xff] }
  0xc5   : > { %1163 = vmatpush.msra.mxu1 %v2303_v62  ;;  %v2396_v62 = vld [vmem:[%s3825_s1 + $0x3a8] sm:$0xff] }
  0xc6   : > { %455 = vmatmul.f32.gmra.mxu1 %v2175_v44  ;;  %617 = vmatmul.f32.gmra.mxu2 %v532_v2 }
  0xc7   : > { %1557 = vmatpush.msra.mxu3 %v2396_v62 }
  0xc8   : > { %814 = vmatmul.f32.gmra.mxu3 %v2177_v46 }
  0xc9   : > { %v3242_v5 = vpop.f32.mrf.mxu2  ;;  %v3244_v6 = vpop.f32.mrf.mxu0 }
  0xcb   : > { %v3249_v7 = vpop.f32.mrf.mxu1  ;;  %v3251_v8 = vpop.f32.mrf.mxu3 }
  0xcc   : > { %1008 = vmatmul.f32.gmra.mxu0 %v2994_v14  ;;  %v2179_v14 = vld [vmem:[%s2805_s26 + $0xa8] sm:$0xff] }
  0xce   : > { %458 = vmatmul.f32.gmra.mxu1 %v2176_v55  ;;  %620 = vmatmul.f32.gmra.mxu2 %v533_v9 }
  0xd0   : > { %817 = vmatmul.f32.gmra.mxu3 %v2178_v11 }
  0xd1   : > { %v3259_v13 = vpop.f32.mrf.mxu2  ;;  %v3261_v58 = vpop.f32.mrf.mxu0 }
  0xd3   : > { %v3263_v18 = vpop.f32.mrf.mxu1  ;;  %v3265_v19 = vpop.f32.mrf.mxu3 }
  0xd4   : > { %1011 = vmatmul.f32.gmra.mxu0 %v3043_v34  ;;  %v2302_v34 = vld [vmem:[%s3825_s1 + $0x2b8] sm:$0xff] }
  0xd5   : > { %1164 = vmatpush.msra.mxu1 %v2302_v34 }
  0xd6   : > { %461 = vmatmul.f32.gmra.mxu1 %v2177_v46  ;;  %623 = vmatmul.f32.gmra.mxu2 %v534_v10  ;;  %v538_v46 = vld [vmem:[%s2805_s26 + $0xc2] sm:$0xff] }
  0xd8   : > { %820 = vmatmul.f32.gmra.mxu3 %v2179_v14 }
  0xd9   : > { %v3276_v22 = vpop.f32.mrf.mxu2  ;;  %v3278_v23 = vpop.f32.mrf.mxu0 }
  0xdb   : > { %v3283_v24 = vpop.f32.mrf.mxu1  ;;  %v3285_v25 = vpop.f32.mrf.mxu3 }
  0xdc   : > { %1014 = vmatmul.f32.gmra.mxu0 %v3083_v49  ;;  %v2181_v49 = vld [vmem:[%s2805_s26 + $0xc0] sm:$0xff] }
  0xde   : > { %464 = vmatmul.f32.gmra.mxu1 %v2178_v11  ;;  %626 = vmatmul.f32.gmra.mxu2 %v535_v26 }
  0xe0   : > { %823 = vmatmul.f32.gmra.mxu3 %v2180_v27 }
  0xe1   : > { %v3293_v29 = vpop.f32.mrf.mxu2  ;;  %v3295_v32 = vpop.f32.mrf.mxu0 }
  0xe3   : > { %v3297_v33 = vpop.f32.mrf.mxu1  ;;  %v3299_v36 = vpop.f32.mrf.mxu3 }
  0xe4   : > { %1017 = vmatmul.f32.gmra.mxu0 %v3108_v57  ;;  %v2301_v57 = vld [vmem:[%s3825_s1 + $0x2b0] sm:$0xff] }
  0xe5   : > { %1165 = vmatpush.msra.mxu1 %v2301_v57 }
  0xe6   : > { %467 = vmatmul.f32.gmra.mxu1 %v2179_v14  ;;  %629 = vmatmul.f32.gmra.mxu2 %v536_v37 }
  0xe7   : > { %1166 = vmatpush.msra.mxu1 %v2300_v12 }
  0xe8   : > { %826 = vmatmul.f32.gmra.mxu3 %v2181_v49 }
  0xe9   : > { %v3310_v40 = vpop.f32.mrf.mxu2  ;;  %v3312_v41 = vpop.f32.mrf.mxu0 }
  0xeb   : > { %v3317_v43 = vpop.f32.mrf.mxu1  ;;  %v3319_v44 = vpop.f32.mrf.mxu3 }
  0xec   : > { %1020 = vmatmul.f32.gmra.mxu0 %v2814_v17  ;;  %v2183_v17 = vld [vmem:[%s2805_s26 + $0xd8] sm:$0xff] }
  0xee   : > { %470 = vmatmul.f32.gmra.mxu1 %v2180_v27  ;;  %632 = vmatmul.f32.gmra.mxu2 %v537_v16  ;;  %v2444_v27 = vld [vmem:[%s3825_s1 + $0x428] sm:$0xff]  ;;  %v2185_v16 = vld [vmem:[%s2805_s26 + $0xf0] sm:$0xff] }
  0xef   : > { %1751 = vmatpush.msra.mxu0 %v2444_v27 }
  0xf0   : > { %829 = vmatmul.f32.gmra.mxu3 %v2182_v45 }
  0xf1   : > { %v3327_v54 = vpop.f32.mrf.mxu2  ;;  %v3329_v55 = vpop.f32.mrf.mxu0 }
  0xf3   : > { %v3331_v56 = vpop.f32.mrf.mxu3  ;;  %v426_v2 = vpop.f32.mrf.mxu1 }
  0xf4   : > { %1023 = vmatmul.f32.gmra.mxu0 %v2854_v31  ;;  %v427_v4 = vadd.f32 %v426_v2, %v3210_v51  ;;  %v2184_v51 = vld [vmem:[%s2805_s26 + $0xe0] sm:$0xff] }
  0xf5   : > { %v2395_v2 = vld [vmem:[%s3825_s1 + $0x3a0] sm:$0xff] }
  0xf6   : > { %473 = vmatmul.f32.gmra.mxu1 %v2181_v49  ;;  %635 = vmatmul.f32.gmra.mxu2 %v538_v46 }
  0xf7   : > { %1558 = vmatpush.msra.mxu3 %v2395_v2 }
  0xf8   : > { %832 = vmatmul.f32.gmra.mxu3 %v2183_v17 }
  0xf9   : > { %v588_v9 = vpop.f32.mrf.mxu2  ;;  %v979_v11 = vpop.f32.mrf.mxu0 }
  0xfa   : > { %v684_v31 = vadd.f32 %v588_v9, %v427_v4  ;;  %v541_v9 = vld [vmem:[%s2805_s26 + $0xe2] sm:$0xff] }
  0xfb   : > { %v429_v10 = vpop.f32.mrf.mxu1  ;;  %v785_v14 = vpop.f32.mrf.mxu3 }
  0xfc   : > { %v881_v21 = vadd.f32 %v785_v14, %v684_v31  ;;  %1026 = vmatmul.f32.gmra.mxu0 %v2900_v47  ;;  %v430_v26 = vadd.f32 %v429_v10, %v3227_v61  ;;  %v540_v47 = vld [vmem:[%s2805_s26 + $0xda] sm:$0xff] }
  0xfd   : > { %v2347_v61 = vld [vmem:[%s3825_s1 + $0x320] sm:$0xff] }
  0xfe   : > { %v3349_v34 = vadd.f32 %v979_v11, %v881_v21  ;;  %476 = vmatmul.f32.gmra.mxu1 %v2182_v45  ;;  %638 = vmatmul.f32.gmra.mxu2 %v539_v20  ;;  %v2443_v10 = vld [vmem:[%s3825_s1 + $0x420] sm:$0xff] }
  0xff   : > { %1364 = vmatpush.msra.mxu2 %v2347_v61  ;;  %1752 = vmatpush.msra.mxu0 %v2443_v10 }
 0x100   : > { %835 = vmatmul.f32.gmra.mxu3 %v2184_v51 }
 0x101   : > { %v591_v28 = vpop.f32.mrf.mxu2  ;;  %v982_v37 = vpop.f32.mrf.mxu0 }
 0x102   : > { %v685_v49 = vadd.f32 %v591_v28, %v430_v26 }
 0x103   : > { %v432_v38 = vpop.f32.mrf.mxu1  ;;  %v788_v39 = vpop.f32.mrf.mxu3 }
 0x104   : > { %v882_v57 = vadd.f32 %v788_v39, %v685_v49  ;;  %1029 = vmatmul.f32.gmra.mxu0 %v2948_v63  ;;  %v433_v30 = vadd.f32 %v432_v38, %v3244_v6  ;;  %v2186_v6 = vld [vmem:[%s2805_s26 + $0xf8] sm:$0xff] }
 0x105   : > { %v2394_v38 = vld [vmem:[%s3825_s1 + $0x398] sm:$0xff] }
 0x106   : > { %v3358_v45 = vadd.f32 %v982_v37, %v882_v57  ;;  %479 = vmatmul.f32.gmra.mxu1 %v2183_v17  ;;  %641 = vmatmul.f32.gmra.mxu2 %v540_v47  ;;  %v2299_v17 = vld [vmem:[%s3825_s1 + $0x2a0] sm:$0xff]  ;;  %v2187_v37 = vld [vmem:[%s2805_s26 + $0x108] sm:$0xff]  ;;  %v2298_v57 = vld [vmem:[%s3825_s1 + $0x298] sm:$0xff] }
 0x107   : > { %1167 = vmatpush.msra.mxu1 %v2299_v17  ;;  %1559 = vmatpush.msra.mxu3 %v2394_v38 }
 0x108   : > { %838 = vmatmul.f32.gmra.mxu3 %v2185_v16 }
 0x109   : > { %v594_v63 = vpop.f32.mrf.mxu2  ;;  %v985_v46 = vpop.f32.mrf.mxu0  ;;  %1168 = vmatpush.msra.mxu1 %v2298_v57 }
 0x10a   : > { %v686_v3 = vadd.f32 %v594_v63, %v433_v30  ;;  %v543_v30 = vld [vmem:[%s2805_s26 + $0xfa] sm:$0xff] }
 0x10b   : > { %v435_v4 = vpop.f32.mrf.mxu1  ;;  %v791_v62 = vpop.f32.mrf.mxu3 }
 0x10c   : > { %v883_v11 = vadd.f32 %v791_v62, %v686_v3  ;;  %1032 = vmatmul.f32.gmra.mxu0 %v2997_v15  ;;  %v436_v12 = vadd.f32 %v435_v4, %v3261_v58  ;;  %v542_v15 = vld [vmem:[%s2805_s26 + $0xf2] sm:$0xff] }
 0x10d   : > { %v2346_v58 = vld [vmem:[%s3825_s1 + $0x318] sm:$0xff] }
 0x10e   : > { %v3373_v31 = vadd.f32 %v985_v46, %v883_v11  ;;  %482 = vmatmul.f32.gmra.mxu1 %v2184_v51  ;;  %644 = vmatmul.f32.gmra.mxu2 %v541_v9  ;;  %v2442_v3 = vld [vmem:[%s3825_s1 + $0x418] sm:$0xff]  ;;  %v544_v11 = vld [vmem:[%s2805_s26 + $0x10a] sm:$0xff] }
 0x10f   : > { %1365 = vmatpush.msra.mxu2 %v2346_v58  ;;  %1753 = vmatpush.msra.mxu0 %v2442_v3  ;;  %v3422_v58 = vld [vmem:[%s2805_s26 + $0x112] sm:$0xff] }
 0x110   : > { %841 = vmatmul.f32.gmra.mxu3 %v2186_v6  ;;  %v2191_v3 = vld [vmem:[%s2805_s26 + $0x138] sm:$0xff] }
 0x111   : > { %v597_v14 = vpop.f32.mrf.mxu2  ;;  %v988_v20 = vpop.f32.mrf.mxu0 }
 0x112   : > { %v687_v21 = vadd.f32 %v597_v14, %v436_v12 }
 0x113   : > { %v438_v26 = vpop.f32.mrf.mxu1  ;;  %v794_v27 = vpop.f32.mrf.mxu3 }
 0x114   : > { %v884_v28 = vadd.f32 %v794_v27, %v687_v21  ;;  %1035 = vmatmul.f32.gmra.mxu0 %v3046_v35  ;;  %v439_v49 = vadd.f32 %v438_v26, %v3278_v23  ;;  %v2188_v23 = vld [vmem:[%s2805_s26 + $0x110] sm:$0xff]  ;;  %v3416_v26 = vld [vmem:[%s2805_s26 + $0x121] sm:$0xff] }
 0x116   : > { %v3382_v51 = vadd.f32 %v988_v20, %v884_v28  ;;  %485 = vmatmul.f32.gmra.mxu1 %v2185_v16  ;;  %647 = vmatmul.f32.gmra.mxu2 %v542_v15  ;;  %v2393_v20 = vld [vmem:[%s3825_s1 + $0x390] sm:$0xff] }
 0x117   : > { %1560 = vmatpush.msra.mxu3 %v2393_v20  ;;  %v2297_v15 = vld [vmem:[%s3825_s1 + $0x290] sm:$0xff] }
 0x118   : > { %844 = vmatmul.f32.gmra.mxu3 %v2187_v37  ;;  %1169 = vmatpush.msra.mxu1 %v2297_v15  ;;  %v3455_v20 = vld [vmem:[%s2805_s26 + $0x12a] sm:$0xff] }
 0x119   : > { %v600_v35 = vpop.f32.mrf.mxu2  ;;  %v991_v39 = vpop.f32.mrf.mxu0  ;;  %v2440_v15 = vld [vmem:[%s3825_s1 + $0x408] sm:$0xff] }
 0x11a   : > { %v688_v47 = vadd.f32 %v600_v35, %v439_v49  ;;  %v2190_v49 = vld [vmem:[%s2805_s26 + $0x128] sm:$0xff] }
 0x11b   : > { %v441_v16 = vpop.f32.mrf.mxu1  ;;  %v797_v61 = vpop.f32.mrf.mxu3 }
 0x11c   : > { %v885_v2 = vadd.f32 %v797_v61, %v688_v47  ;;  %1038 = vmatmul.f32.gmra.mxu0 %v3086_v50  ;;  %v442_v46 = vadd.f32 %v441_v16, %v3295_v32  ;;  %v2345_v32 = vld [vmem:[%s3825_s1 + $0x310] sm:$0xff] }
 0x11d   : > { %1366 = vmatpush.msra.mxu2 %v2345_v32  ;;  %v3434_v16 = vld [vmem:[%s2805_s26 + $0x129] sm:$0xff] }
 0x11e   : > { %v3397_v63 = vadd.f32 %v991_v39, %v885_v2  ;;  %488 = vmatmul.f32.gmra.mxu1 %v2186_v6  ;;  %650 = vmatmul.f32.gmra.mxu2 %v543_v30  ;;  %v2189_v6 = vld [vmem:[%s2805_s26 + $0x120] sm:$0xff]  ;;  %v2441_v39 = vld [vmem:[%s3825_s1 + $0x410] sm:$0xff] }
 0x11f   : > { %1754 = vmatpush.msra.mxu0 %v2441_v39 }
 0x120   : > { %847 = vmatmul.f32.gmra.mxu3 %v2188_v23 }
 0x121   : > { %v603_v17 = vpop.f32.mrf.mxu2  ;;  %v994_v4 = vpop.f32.mrf.mxu0  ;;  %1755 = vmatpush.msra.mxu0 %v2440_v15 }
 0x122   : > { %v689_v62 = vadd.f32 %v603_v17, %v442_v46  ;;  %v546_v46 = vld [vmem:[%s2805_s26 + $0x122] sm:$0xff] }
 0x123   : > { %v444_v9 = vpop.f32.mrf.mxu1  ;;  %v800_v50 = vpop.f32.mrf.mxu3  ;;  %v2344_v17 = vld [vmem:[%s3825_s1 + $0x308] sm:$0xff] }
 0x124   : > { %v886_v12 = vadd.f32 %v800_v50, %v689_v62  ;;  %1041 = vmatmul.f32.gmra.mxu0 %v3111_v59  ;;  %v445_v14 = vadd.f32 %v444_v9, %v3312_v41  ;;  %1367 = vmatpush.msra.mxu2 %v2344_v17  ;;  %v2392_v62 = vld [vmem:[%s3825_s1 + $0x388] sm:$0xff] }
 0x125   : > { %1561 = vmatpush.msra.mxu3 %v2392_v62  ;;  %v2295_v62 = vld [vmem:[%s3825_s1 + $0x280] sm:$0xff] }
 0x126   : > { %v3406_v10 = vadd.f32 %v994_v4, %v886_v12  ;;  %491 = vmatmul.f32.gmra.mxu1 %v2187_v37  ;;  %653 = vmatmul.f32.gmra.mxu2 %v544_v11  ;;  %v3449_v11 = vld [vmem:[%s2805_s26 + $0x139] sm:$0xff] }
 0x128   : > { %850 = vmatmul.f32.gmra.mxu3 %v2189_v6 }
 0x129   : > { %v606_v59 = vpop.f32.mrf.mxu2  ;;  %v997_v21 = vpop.f32.mrf.mxu0 }
 0x12a   : > { %v690_v27 = vadd.f32 %v606_v59, %v445_v14  ;;  %v2192_v59 = vld [vmem:[%s2805_s26 + $0x140] sm:$0xff] }
 0x12b   : > { %v447_v28 = vpop.f32.mrf.mxu1  ;;  %v803_v37 = vpop.f32.mrf.mxu3 }
 0x12c   : > { %v887_v41 = vadd.f32 %v803_v37, %v690_v27  ;;  %1044 = vmatmul.f32.gmra.mxu0 %v3416_v26  ;;  %v448_v35 = vadd.f32 %v447_v28, %v3329_v55 }
 0x12e   : > { %v3426_v38 = vadd.f32 %v997_v21, %v887_v41  ;;  %494 = vmatmul.f32.gmra.mxu1 %v2188_v23  ;;  %656 = vmatmul.f32.gmra.mxu2 %v3422_v58  ;;  %v3467_v41 = vld [vmem:[%s2805_s26 + $0x141] sm:$0xff] }
 0x130   : > { %853 = vmatmul.f32.gmra.mxu3 %v2190_v49 }
 0x131   : > { %v609_v47 = vpop.f32.mrf.mxu2  ;;  %v1000_v57 = vpop.f32.mrf.mxu0 }
 0x132   : > { %v691_v61 = vadd.f32 %v609_v47, %v448_v35 }
 0x133   : > { %v450_v30 = vpop.f32.mrf.mxu1  ;;  %v806_v2 = vpop.f32.mrf.mxu3 }
 0x134   : > { %v888_v23 = vadd.f32 %v806_v2, %v691_v61  ;;  %1047 = vmatmul.f32.gmra.mxu0 %v3434_v16  ;;  %v451_v4 = vadd.f32 %v450_v30, %v3197_v42  ;;  %v2343_v30 = vld [vmem:[%s3825_s1 + $0x300] sm:$0xff] }
 0x135   : > { %1368 = vmatpush.msra.mxu2 %v2343_v30 }
 0x136   : > { %v3439_v55 = vadd.f32 %v1000_v57, %v888_v23  ;;  %497 = vmatmul.f32.gmra.mxu1 %v2189_v6  ;;  %659 = vmatmul.f32.gmra.mxu2 %v546_v46  ;;  %v2296_v6 = vld [vmem:[%s3825_s1 + $0x288] sm:$0xff]  ;;  %v3470_v57 = vld [vmem:[%s2805_s26 + $0x13a] sm:$0xff] }
 0x137   : > { %1170 = vmatpush.msra.mxu1 %v2296_v6  ;;  %v2391_v46 = vld [vmem:[%s3825_s1 + $0x380] sm:$0xff]  ;;  %v2194_v6 = vld [vmem:[%s2805_s26 + $0x158] sm:$0xff] }
 0x138   : > { %856 = vmatmul.f32.gmra.mxu3 %v2191_v3 }
 0x139   : > { %v612_v9 = vpop.f32.mrf.mxu2  ;;  %v1003_v50 = vpop.f32.mrf.mxu0  ;;  %1562 = vmatpush.msra.mxu3 %v2391_v46  ;;  %1171 = vmatpush.msra.mxu1 %v2295_v62 }
 0x13a   : > { %v692_v12 = vadd.f32 %v612_v9, %v451_v4  ;;  %v3485_v4 = vld [vmem:[%s2805_s26 + $0x151] sm:$0xff] }
 0x13b   : > { %v453_v32 = vpop.f32.mrf.mxu1  ;;  %v809_v14 = vpop.f32.mrf.mxu3 }
 0x13c   : > { %v889_v42 = vadd.f32 %v809_v14, %v692_v12  ;;  %1050 = vmatmul.f32.gmra.mxu0 %v3449_v11  ;;  %v454_v27 = vadd.f32 %v453_v32, %v3215_v52  ;;  %v2193_v52 = vld [vmem:[%s2805_s26 + $0x150] sm:$0xff]  ;;  %v3491_v12 = vld [vmem:[%s2805_s26 + $0x142] sm:$0xff] }
 0x13e   : > { %v3459_v21 = vadd.f32 %v1003_v50, %v889_v42  ;;  %500 = vmatmul.f32.gmra.mxu1 %v2190_v49  ;;  %662 = vmatmul.f32.gmra.mxu2 %v3455_v20  ;;  %v2439_v42 = vld [vmem:[%s3825_s1 + $0x400] sm:$0xff] }
 0x13f   : > { %1756 = vmatpush.msra.mxu0 %v2439_v42 }
 0x140   : > { %859 = vmatmul.f32.gmra.mxu3 %v2192_v59 }
 0x141   : > { %v615_v28 = vpop.f32.mrf.mxu2  ;;  %v1006_v37 = vpop.f32.mrf.mxu0 }
 0x142   : > { %v693_v35 = vadd.f32 %v615_v28, %v454_v27  ;;  %v3503_v28 = vld [vmem:[%s2805_s26 + $0x159] sm:$0xff] }
 0x143   : > { %v456_v39 = vpop.f32.mrf.mxu1  ;;  %v812_v47 = vpop.f32.mrf.mxu3 }
 0x144   : > { %v890_v49 = vadd.f32 %v812_v47, %v693_v35  ;;  %1053 = vmatmul.f32.gmra.mxu0 %v3467_v41  ;;  %v457_v2 = vadd.f32 %v456_v39, %v3229_v0 }
 0x146   : > { %v3474_v61 = vadd.f32 %v1006_v37, %v890_v49  ;;  %503 = vmatmul.f32.gmra.mxu1 %v2191_v3  ;;  %665 = vmatmul.f32.gmra.mxu2 %v3470_v57 }
 0x148   : > { %862 = vmatmul.f32.gmra.mxu3 %v2193_v52 }
 0x149   : > { %v618_v23 = vpop.f32.mrf.mxu2  ;;  %v1009_v17 = vpop.f32.mrf.mxu0 }
 0x14a   : > { %v694_v3 = vadd.f32 %v618_v23, %v457_v2  ;;  %v3515_v23 = vld [vmem:[%s2805_s26 + $0x169] sm:$0xff] }
 0x14b   : > { %v459_v9 = vpop.f32.mrf.mxu1  ;;  %v815_v50 = vpop.f32.mrf.mxu3 }
 0x14c   : > { %v891_v0 = vadd.f32 %v815_v50, %v694_v3  ;;  %1056 = vmatmul.f32.gmra.mxu0 %v3485_v4  ;;  %v460_v14 = vadd.f32 %v459_v9, %v3249_v7  ;;  %v2195_v7 = vld [vmem:[%s2805_s26 + $0x168] sm:$0xff]  ;;  %v3518_v9 = vld [vmem:[%s2805_s26 + $0x15a] sm:$0xff] }
 0x14e   : > { %v3495_v32 = vadd.f32 %v1009_v17, %v891_v0  ;;  %506 = vmatmul.f32.gmra.mxu1 %v2192_v59  ;;  %668 = vmatmul.f32.gmra.mxu2 %v3491_v12  ;;  %v3506_v59 = vld [vmem:[%s2805_s26 + $0x152] sm:$0xff] }
 0x150   : > { %865 = vmatmul.f32.gmra.mxu3 %v2194_v6 }
 0x151   : > { %v621_v27 = vpop.f32.mrf.mxu2  ;;  %v1012_v15 = vpop.f32.mrf.mxu0 }
 0x152   : > { %v695_v37 = vadd.f32 %v621_v27, %v460_v14  ;;  %v3527_v27 = vld [vmem:[%s2805_s26 + $0x171] sm:$0xff] }
 0x153   : > { %v462_v35 = vpop.f32.mrf.mxu1  ;;  %v818_v39 = vpop.f32.mrf.mxu3 }
 0x154   : > { %v892_v47 = vadd.f32 %v818_v39, %v695_v37  ;;  %1059 = vmatmul.f32.gmra.mxu0 %v3503_v28  ;;  %v463_v30 = vadd.f32 %v462_v35, %v3263_v18  ;;  %v3530_v39 = vld [vmem:[%s2805_s26 + $0x16a] sm:$0xff] }
 0x156   : > { %v3510_v49 = vadd.f32 %v1012_v15, %v892_v47  ;;  %509 = vmatmul.f32.gmra.mxu1 %v2193_v52  ;;  %671 = vmatmul.f32.gmra.mxu2 %v3506_v59  ;;  %v2196_v52 = vld [vmem:[%s2805_s26 + $0x170] sm:$0xff] }
 0x158   : > { %868 = vmatmul.f32.gmra.mxu3 %v2195_v7 }
 0x159   : > { %v624_v2 = vpop.f32.mrf.mxu2  ;;  %v1015_v46 = vpop.f32.mrf.mxu0 }
 0x15a   : > { %v696_v17 = vadd.f32 %v624_v2, %v463_v30 }
 0x15b   : > { %v465_v3 = vpop.f32.mrf.mxu1  ;;  %v821_v62 = vpop.f32.mrf.mxu3 }
 0x15c   : > { %v893_v50 = vadd.f32 %v821_v62, %v696_v17  ;;  %1062 = vmatmul.f32.gmra.mxu0 %v3515_v23  ;;  %v466_v18 = vadd.f32 %v465_v3, %v3283_v24  ;;  %v3539_v17 = vld [vmem:[%s2805_s26 + $0x181] sm:$0xff] }
 0x15e   : > { %v3522_v0 = vadd.f32 %v1015_v46, %v893_v50  ;;  %512 = vmatmul.f32.gmra.mxu1 %v2194_v6  ;;  %674 = vmatmul.f32.gmra.mxu2 %v3518_v9  ;;  %v2197_v6 = vld [vmem:[%s2805_s26 + $0x180] sm:$0xff] }
 0x160   : > { %871 = vmatmul.f32.gmra.mxu3 %v2196_v52 }
 0x161   : > { %v627_v14 = vpop.f32.mrf.mxu2  ;;  %v1018_v42 = vpop.f32.mrf.mxu0 }
 0x162   : > { %v697_v15 = vadd.f32 %v627_v14, %v466_v18  ;;  %v3542_v18 = vld [vmem:[%s2805_s26 + $0x172] sm:$0xff] }
 0x163   : > { %v468_v37 = vpop.f32.mrf.mxu1  ;;  %v824_v35 = vpop.f32.mrf.mxu3 }
 0x164   : > { %v894_v47 = vadd.f32 %v824_v35, %v697_v15  ;;  %1065 = vmatmul.f32.gmra.mxu0 %v3527_v27  ;;  %v469_v24 = vadd.f32 %v468_v37, %v3297_v33  ;;  %v3551_v35 = vld [vmem:[%s2805_s26 + $0x189] sm:$0xff] }
 0x166   : > { %v3534_v30 = vadd.f32 %v1018_v42, %v894_v47  ;;  %515 = vmatmul.f32.gmra.mxu1 %v2195_v7  ;;  %677 = vmatmul.f32.gmra.mxu2 %v3530_v39  ;;  %v2198_v7 = vld [vmem:[%s2805_s26 + $0x188] sm:$0xff] }
 0x168   : > { %3830 = vst [vmem:[#allocation8_spill] sm:$0xff] %v3534_v30  ;;  %874 = vmatmul.f32.gmra.mxu3 %v2197_v6  ;;  %v2264_v30 = vld [vmem:[%s2805_s26 + $0x22] sm:$0xff] }
 0x169   : > { %v630_v2 = vpop.f32.mrf.mxu2  ;;  %v1021_v46 = vpop.f32.mrf.mxu0 }
 0x16a   : > { %v698_v3 = vadd.f32 %v630_v2, %v469_v24  ;;  %v2263_v2 = vld [vmem:[%s2805_s26 + $0x1a] sm:$0xff] }
 0x16b   : > { %v471_v62 = vpop.f32.mrf.mxu1  ;;  %v827_v50 = vpop.f32.mrf.mxu3 }
 0x16c   : > { %v895_v14 = vadd.f32 %v827_v50, %v698_v3  ;;  %1068 = vmatmul.f32.gmra.mxu0 %v3539_v17  ;;  %v472_v33 = vadd.f32 %v471_v62, %v3317_v43  ;;  %v2311_v3 = vld [vmem:[%s2805_s26 + $0x30] sm:$0xff] }
 0x16e   : > { %v3546_v42 = vadd.f32 %v1021_v46, %v895_v14  ;;  %518 = vmatmul.f32.gmra.mxu1 %v2196_v52  ;;  %680 = vmatmul.f32.gmra.mxu2 %v3542_v18  ;;  %v2359_v52 = vld [vmem:[%s2805_s26 + $0x31] sm:$0xff] }
 0x170   : > { %3831 = vst [vmem:[#allocation9_spill] sm:$0xff] %v3546_v42  ;;  %877 = vmatmul.f32.gmra.mxu3 %v2198_v7  ;;  %v2407_v7 = vld [vmem:[%s2805_s26 + $0x32] sm:$0xff] }
 0x171   : > { %v633_v15 = vpop.f32.mrf.mxu2  ;;  %v1024_v37 = vpop.f32.mrf.mxu0 }
 0x172   : > { %v699_v47 = vadd.f32 %v633_v15, %v472_v33 }
 0x173   : > { %v474_v6 = vpop.f32.mrf.mxu1  ;;  %v830_v24 = vpop.f32.mrf.mxu3 }
 0x174   : > { %v896_v46 = vadd.f32 %v830_v24, %v699_v47  ;;  %1071 = vmatmul.f32.gmra.mxu0 %v3551_v35  ;;  %v475_v43 = vadd.f32 %v474_v6, %v3208_v48  ;;  %v2312_v47 = vld [vmem:[%s2805_s26 + $0x38] sm:$0xff] }
 0x176   : > { %v3557_v50 = vadd.f32 %v1024_v37, %v896_v46  ;;  %1172 = vmatmul.f32.vlgmr.msra.gmra.mxu1 %v2263_v2  ;;  %1369 = vmatmul.f32.vlgmr.msra.gmra.mxu2 %v2311_v3  ;;  %v2360_v37 = vld [vmem:[%s2805_s26 + $0x39] sm:$0xff] }
 0x177   : > { %v2408_v3 = vld [vmem:[%s2805_s26 + $0x3a] sm:$0xff] }
 0x178   : > { %3832 = vst [vmem:[#allocation10_spill] sm:$0xff] %v3557_v50  ;;  %1563 = vmatmul.f32.vlgmr.msra.gmra.mxu3 %v2359_v52  ;;  %v2313_v50 = vld [vmem:[%s2805_s26 + $0x48] sm:$0xff] }
 0x179   : > { %v636_v62 = vpop.f32.mrf.mxu2  ;;  %v1027_v14 = vpop.f32.mrf.mxu0 }
 0x17a   : > { %v700_v33 = vadd.f32 %v636_v62, %v475_v43 }
 0x17b   : > { %v477_v15 = vpop.f32.mrf.mxu1  ;;  %v833_v42 = vpop.f32.mrf.mxu3 }
 0x17c   : > { %v897_v24 = vadd.f32 %v833_v42, %v700_v33  ;;  %1757 = vmatmul.f32.vlgmr.msra.gmra.mxu0 %v2407_v7  ;;  %v478_v48 = vadd.f32 %v477_v15, %v3225_v60  ;;  %v2361_v33 = vld [vmem:[%s2805_s26 + $0x49] sm:$0xff] }
 0x17e   : > { %v3564_v46 = vadd.f32 %v1027_v14, %v897_v24  ;;  %1175 = vmatmul.f32.gmra.mxu1 %v2264_v30  ;;  %1372 = vmatmul.f32.gmra.mxu2 %v2312_v47  ;;  %v2409_v47 = vld [vmem:[%s2805_s26 + $0x4a] sm:$0xff] }
 0x180   : > { %1566 = vmatmul.f32.gmra.mxu3 %v2360_v37 }
 0x181   : > { %v639_v6 = vpop.f32.mrf.mxu2  ;;  %v1030_v2 = vpop.f32.mrf.mxu0 }
 0x182   : > { %v701_v52 = vadd.f32 %v639_v6, %v478_v48  ;;  %v2314_v6 = vld [vmem:[%s2805_s26 + $0x50] sm:$0xff] }
 0x183   : > { %v480_v43 = vpop.f32.mrf.mxu1  ;;  %v836_v62 = vpop.f32.mrf.mxu3 }
 0x184   : > { %v898_v42 = vadd.f32 %v836_v62, %v701_v52  ;;  %1760 = vmatmul.f32.gmra.mxu0 %v2408_v3  ;;  %v481_v60 = vadd.f32 %v480_v43, %v3242_v5  ;;  %v2362_v62 = vld [vmem:[%s2805_s26 + $0x51] sm:$0xff] }
 0x185   : > { %v2410_v43 = vld [vmem:[%s2805_s26 + $0x52] sm:$0xff] }
 0x186   : > { %v3570_v14 = vadd.f32 %v1030_v2, %v898_v42  ;;  %1178 = vmatmul.f32.gmra.mxu1 %v2407_v7  ;;  %1375 = vmatmul.f32.gmra.mxu2 %v2313_v50 }
 0x188   : > { %1569 = vmatmul.f32.gmra.mxu3 %v2361_v33 }
 0x189   : > { %v642_v30 = vpop.f32.mrf.mxu2  ;;  %v1033_v15 = vpop.f32.mrf.mxu0 }
 0x18a   : > { %v702_v24 = vadd.f32 %v642_v30, %v481_v60  ;;  %v2315_v30 = vld [vmem:[%s2805_s26 + $0x60] sm:$0xff] }
 0x18b   : > { %v483_v37 = vpop.f32.mrf.mxu1  ;;  %v839_v48 = vpop.f32.mrf.mxu3 }
 0x18c   : > { %v899_v52 = vadd.f32 %v839_v48, %v702_v24  ;;  %1763 = vmatmul.f32.gmra.mxu0 %v2409_v47  ;;  %v484_v5 = vadd.f32 %v483_v37, %v3259_v13  ;;  %v2363_v48 = vld [vmem:[%s2805_s26 + $0x61] sm:$0xff] }
 0x18e   : > { %v3576_v2 = vadd.f32 %v1033_v15, %v899_v52  ;;  %1181 = vmatmul.f32.gmra.mxu1 %v2408_v3  ;;  %1378 = vmatmul.f32.gmra.mxu2 %v2314_v6  ;;  %v2411_v6 = vld [vmem:[%s2805_s26 + $0x62] sm:$0xff] }
 0x190   : > { %1572 = vmatmul.f32.gmra.mxu3 %v2362_v62 }
 0x191   : > { %v645_v50 = vpop.f32.mrf.mxu2  ;;  %v1036_v7 = vpop.f32.mrf.mxu0 }
 0x192   : > { %v703_v42 = vadd.f32 %v645_v50, %v484_v5  ;;  %v2316_v50 = vld [vmem:[%s2805_s26 + $0x68] sm:$0xff] }
 0x193   : > { %v486_v33 = vpop.f32.mrf.mxu1  ;;  %v842_v60 = vpop.f32.mrf.mxu3 }
 0x194   : > { %v900_v24 = vadd.f32 %v842_v60, %v703_v42  ;;  %1766 = vmatmul.f32.gmra.mxu0 %v2410_v43  ;;  %v487_v13 = vadd.f32 %v486_v33, %v3276_v22  ;;  %v2364_v60 = vld [vmem:[%s2805_s26 + $0x69] sm:$0xff] }
 0x196   : > { %v3582_v15 = vadd.f32 %v1036_v7, %v900_v24  ;;  %1184 = vmatmul.f32.gmra.mxu1 %v2409_v47  ;;  %1381 = vmatmul.f32.gmra.mxu2 %v2315_v30  ;;  %v2412_v30 = vld [vmem:[%s2805_s26 + $0x6a] sm:$0xff] }
 0x198   : > { %1575 = vmatmul.f32.gmra.mxu3 %v2363_v48 }
 0x199   : > { %v648_v3 = vpop.f32.mrf.mxu2  ;;  %v1039_v37 = vpop.f32.mrf.mxu0 }
 0x19a   : > { %v704_v52 = vadd.f32 %v648_v3, %v487_v13  ;;  %v2317_v3 = vld [vmem:[%s2805_s26 + $0x78] sm:$0xff] }
 0x19b   : > { %v489_v62 = vpop.f32.mrf.mxu1  ;;  %v845_v5 = vpop.f32.mrf.mxu3 }
 0x19c   : > { %v901_v42 = vadd.f32 %v845_v5, %v704_v52  ;;  %1769 = vmatmul.f32.gmra.mxu0 %v2411_v6  ;;  %v490_v22 = vadd.f32 %v489_v62, %v3293_v29  ;;  %v2365_v5 = vld [vmem:[%s2805_s26 + $0x79] sm:$0xff] }
 0x19e   : > { %v3588_v7 = vadd.f32 %v1039_v37, %v901_v42  ;;  %1187 = vmatmul.f32.gmra.mxu1 %v2410_v43  ;;  %1384 = vmatmul.f32.gmra.mxu2 %v2316_v50  ;;  %v2413_v50 = vld [vmem:[%s2805_s26 + $0x7a] sm:$0xff] }
 0x1a0   : > { %1578 = vmatmul.f32.gmra.mxu3 %v2364_v60 }
 0x1a1   : > { %v651_v47 = vpop.f32.mrf.mxu2  ;;  %v1042_v33 = vpop.f32.mrf.mxu0 }
 0x1a2   : > { %v705_v24 = vadd.f32 %v651_v47, %v490_v22  ;;  %v2318_v47 = vld [vmem:[%s2805_s26 + $0x80] sm:$0xff] }
 0x1a3   : > { %v492_v48 = vpop.f32.mrf.mxu1  ;;  %v848_v13 = vpop.f32.mrf.mxu3 }
 0x1a4   : > { %v902_v52 = vadd.f32 %v848_v13, %v705_v24  ;;  %1772 = vmatmul.f32.gmra.mxu0 %v2412_v30  ;;  %v493_v29 = vadd.f32 %v492_v48, %v3310_v40  ;;  %v2366_v13 = vld [vmem:[%s2805_s26 + $0x81] sm:$0xff] }
 0x1a6   : > { %v3594_v37 = vadd.f32 %v1042_v33, %v902_v52  ;;  %1190 = vmatmul.f32.gmra.mxu1 %v2411_v6  ;;  %1387 = vmatmul.f32.gmra.mxu2 %v2317_v3  ;;  %v2414_v3 = vld [vmem:[%s2805_s26 + $0x82] sm:$0xff] }
 0x1a8   : > { %1581 = vmatmul.f32.gmra.mxu3 %v2365_v5 }
 0x1a9   : > { %v654_v43 = vpop.f32.mrf.mxu2  ;;  %v1045_v62 = vpop.f32.mrf.mxu0 }
 0x1aa   : > { %v706_v42 = vadd.f32 %v654_v43, %v493_v29  ;;  %v2319_v43 = vld [vmem:[%s2805_s26 + $0x90] sm:$0xff] }
 0x1ab   : > { %v495_v60 = vpop.f32.mrf.mxu1  ;;  %v851_v22 = vpop.f32.mrf.mxu3 }
 0x1ac   : > { %v903_v24 = vadd.f32 %v851_v22, %v706_v42  ;;  %1775 = vmatmul.f32.gmra.mxu0 %v2413_v50  ;;  %v496_v40 = vadd.f32 %v495_v60, %v3327_v54  ;;  %v2367_v22 = vld [vmem:[%s2805_s26 + $0x91] sm:$0xff] }
 0x1ae   : > { %v3600_v33 = vadd.f32 %v1045_v62, %v903_v24  ;;  %1193 = vmatmul.f32.gmra.mxu1 %v2412_v30  ;;  %1390 = vmatmul.f32.gmra.mxu2 %v2318_v47  ;;  %v2415_v47 = vld [vmem:[%s2805_s26 + $0x92] sm:$0xff] }
 0x1b0   : > { %1584 = vmatmul.f32.gmra.mxu3 %v2366_v13 }
 0x1b1   : > { %v657_v6 = vpop.f32.mrf.mxu2  ;;  %v1048_v48 = vpop.f32.mrf.mxu0 }
 0x1b2   : > { %v707_v52 = vadd.f32 %v657_v6, %v496_v40  ;;  %v2320_v6 = vld [vmem:[%s2805_s26 + $0x98] sm:$0xff] }
 0x1b3   : > { %v498_v5 = vpop.f32.mrf.mxu1  ;;  %v854_v29 = vpop.f32.mrf.mxu3 }
 0x1b4   : > { %v904_v42 = vadd.f32 %v854_v29, %v707_v52  ;;  %1778 = vmatmul.f32.gmra.mxu0 %v2414_v3  ;;  %v499_v54 = vadd.f32 %v498_v5, %v3217_v53  ;;  %v2368_v29 = vld [vmem:[%s2805_s26 + $0x99] sm:$0xff] }
 0x1b6   : > { %v3606_v62 = vadd.f32 %v1048_v48, %v904_v42  ;;  %1196 = vmatmul.f32.gmra.mxu1 %v2413_v50  ;;  %1393 = vmatmul.f32.gmra.mxu2 %v2319_v43  ;;  %v2416_v43 = vld [vmem:[%s2805_s26 + $0x9a] sm:$0xff] }
 0x1b8   : > { %1587 = vmatmul.f32.gmra.mxu3 %v2367_v22 }
 0x1b9   : > { %v660_v30 = vpop.f32.mrf.mxu2  ;;  %v1051_v60 = vpop.f32.mrf.mxu0 }
 0x1ba   : > { %v708_v24 = vadd.f32 %v660_v30, %v499_v54  ;;  %v2321_v30 = vld [vmem:[%s2805_s26 + $0xa8] sm:$0xff] }
 0x1bb   : > { %v501_v13 = vpop.f32.mrf.mxu1  ;;  %v857_v40 = vpop.f32.mrf.mxu3 }
 0x1bc   : > { %v905_v52 = vadd.f32 %v857_v40, %v708_v24  ;;  %1781 = vmatmul.f32.gmra.mxu0 %v2415_v47  ;;  %v502_v53 = vadd.f32 %v501_v13, %v3231_v1  ;;  %v2369_v40 = vld [vmem:[%s2805_s26 + $0xa9] sm:$0xff] }
 0x1be   : > { %v3612_v48 = vadd.f32 %v1051_v60, %v905_v52  ;;  %1199 = vmatmul.f32.gmra.mxu1 %v2414_v3  ;;  %1396 = vmatmul.f32.gmra.mxu2 %v2320_v6  ;;  %v2417_v6 = vld [vmem:[%s2805_s26 + $0xaa] sm:$0xff] }
 0x1c0   : > { %1590 = vmatmul.f32.gmra.mxu3 %v2368_v29 }
 0x1c1   : > { %v663_v50 = vpop.f32.mrf.mxu2  ;;  %v1054_v5 = vpop.f32.mrf.mxu0 }
 0x1c2   : > { %v709_v42 = vadd.f32 %v663_v50, %v502_v53  ;;  %v2322_v50 = vld [vmem:[%s2805_s26 + $0xb0] sm:$0xff] }
 0x1c3   : > { %v504_v22 = vpop.f32.mrf.mxu1  ;;  %v860_v54 = vpop.f32.mrf.mxu3 }
 0x1c4   : > { %v906_v24 = vadd.f32 %v860_v54, %v709_v42  ;;  %1784 = vmatmul.f32.gmra.mxu0 %v2416_v43  ;;  %v505_v1 = vadd.f32 %v504_v22, %v3251_v8  ;;  %v2370_v54 = vld [vmem:[%s2805_s26 + $0xb1] sm:$0xff] }
 0x1c6   : > { %v3618_v60 = vadd.f32 %v1054_v5, %v906_v24  ;;  %1202 = vmatmul.f32.gmra.mxu1 %v2415_v47  ;;  %1399 = vmatmul.f32.gmra.mxu2 %v2321_v30  ;;  %v2418_v30 = vld [vmem:[%s2805_s26 + $0xb2] sm:$0xff] }
 0x1c8   : > { %1593 = vmatmul.f32.gmra.mxu3 %v2369_v40 }
 0x1c9   : > { %v666_v3 = vpop.f32.mrf.mxu2  ;;  %v1057_v13 = vpop.f32.mrf.mxu0 }
 0x1ca   : > { %v710_v52 = vadd.f32 %v666_v3, %v505_v1  ;;  %v2323_v3 = vld [vmem:[%s2805_s26 + $0xc0] sm:$0xff] }
 0x1cb   : > { %v507_v29 = vpop.f32.mrf.mxu1  ;;  %v863_v53 = vpop.f32.mrf.mxu3 }
 0x1cc   : > { %v907_v42 = vadd.f32 %v863_v53, %v710_v52  ;;  %1787 = vmatmul.f32.gmra.mxu0 %v2417_v6  ;;  %v508_v8 = vadd.f32 %v507_v29, %v3265_v19  ;;  %v2371_v53 = vld [vmem:[%s2805_s26 + $0xc1] sm:$0xff] }
 0x1ce   : > { %v3624_v5 = vadd.f32 %v1057_v13, %v907_v42  ;;  %1205 = vmatmul.f32.gmra.mxu1 %v2416_v43  ;;  %1402 = vmatmul.f32.gmra.mxu2 %v2322_v50  ;;  %v2419_v50 = vld [vmem:[%s2805_s26 + $0xc2] sm:$0xff] }
 0x1d0   : > { %1596 = vmatmul.f32.gmra.mxu3 %v2370_v54 }
 0x1d1   : > { %v669_v47 = vpop.f32.mrf.mxu2  ;;  %v1060_v22 = vpop.f32.mrf.mxu0 }
 0x1d2   : > { %v711_v24 = vadd.f32 %v669_v47, %v508_v8  ;;  %v2324_v47 = vld [vmem:[%s2805_s26 + $0xc8] sm:$0xff] }
 0x1d3   : > { %v510_v40 = vpop.f32.mrf.mxu1  ;;  %v866_v1 = vpop.f32.mrf.mxu3 }
 0x1d4   : > { %v908_v52 = vadd.f32 %v866_v1, %v711_v24  ;;  %1790 = vmatmul.f32.gmra.mxu0 %v2418_v30  ;;  %v511_v19 = vadd.f32 %v510_v40, %v3285_v25  ;;  %v2372_v1 = vld [vmem:[%s2805_s26 + $0xc9] sm:$0xff] }
 0x1d6   : > { %v3630_v13 = vadd.f32 %v1060_v22, %v908_v52  ;;  %1208 = vmatmul.f32.gmra.mxu1 %v2417_v6  ;;  %1405 = vmatmul.f32.gmra.mxu2 %v2323_v3  ;;  %v2420_v3 = vld [vmem:[%s2805_s26 + $0xca] sm:$0xff] }
 0x1d8   : > { %1599 = vmatmul.f32.gmra.mxu3 %v2371_v53 }
 0x1d9   : > { %v672_v43 = vpop.f32.mrf.mxu2  ;;  %v1063_v29 = vpop.f32.mrf.mxu0 }
 0x1da   : > { %v712_v42 = vadd.f32 %v672_v43, %v511_v19  ;;  %v2325_v43 = vld [vmem:[%s2805_s26 + $0xd8] sm:$0xff] }
 0x1db   : > { %v513_v54 = vpop.f32.mrf.mxu1  ;;  %v869_v8 = vpop.f32.mrf.mxu3 }
 0x1dc   : > { %v909_v24 = vadd.f32 %v869_v8, %v712_v42  ;;  %1793 = vmatmul.f32.gmra.mxu0 %v2419_v50  ;;  %v514_v25 = vadd.f32 %v513_v54, %v3299_v36  ;;  %v2373_v8 = vld [vmem:[%s2805_s26 + $0xd9] sm:$0xff] }
 0x1de   : > { %v3636_v22 = vadd.f32 %v1063_v29, %v909_v24  ;;  %1211 = vmatmul.f32.gmra.mxu1 %v2418_v30  ;;  %1408 = vmatmul.f32.gmra.mxu2 %v2324_v47  ;;  %v2421_v47 = vld [vmem:[%s2805_s26 + $0xda] sm:$0xff] }
 0x1e0   : > { %1602 = vmatmul.f32.gmra.mxu3 %v2372_v1 }
 0x1e1   : > { %v675_v6 = vpop.f32.mrf.mxu2  ;;  %v1066_v40 = vpop.f32.mrf.mxu0 }
 0x1e2   : > { %v713_v52 = vadd.f32 %v675_v6, %v514_v25  ;;  %v2326_v6 = vld [vmem:[%s2805_s26 + $0xe0] sm:$0xff] }
 0x1e3   : > { %v516_v53 = vpop.f32.mrf.mxu1  ;;  %v872_v19 = vpop.f32.mrf.mxu3 }
 0x1e4   : > { %v910_v42 = vadd.f32 %v872_v19, %v713_v52  ;;  %1796 = vmatmul.f32.gmra.mxu0 %v2420_v3  ;;  %v517_v36 = vadd.f32 %v516_v53, %v3319_v44  ;;  %v2374_v19 = vld [vmem:[%s2805_s26 + $0xe1] sm:$0xff] }
 0x1e6   : > { %v3642_v29 = vadd.f32 %v1066_v40, %v910_v42  ;;  %1214 = vmatmul.f32.gmra.mxu1 %v2419_v50  ;;  %1411 = vmatmul.f32.gmra.mxu2 %v2325_v43  ;;  %v2422_v43 = vld [vmem:[%s2805_s26 + $0xe2] sm:$0xff] }
 0x1e8   : > { %3833 = vst [vmem:[#allocation11_spill] sm:$0xff] %v3642_v29  ;;  %1605 = vmatmul.f32.gmra.mxu3 %v2373_v8 }
 0x1e9   : > { %v678_v30 = vpop.f32.mrf.mxu2  ;;  %v1069_v54 = vpop.f32.mrf.mxu0 }
 0x1ea   : > { %v714_v24 = vadd.f32 %v678_v30, %v517_v36  ;;  %v2327_v30 = vld [vmem:[%s2805_s26 + $0xf0] sm:$0xff] }
 0x1eb   : > { %v519_v1 = vpop.f32.mrf.mxu1  ;;  %v875_v25 = vpop.f32.mrf.mxu3 }
 0x1ec   : > { %v911_v52 = vadd.f32 %v875_v25, %v714_v24  ;;  %1799 = vmatmul.f32.gmra.mxu0 %v2421_v47  ;;  %v520_v44 = vadd.f32 %v519_v1, %v3331_v56  ;;  %v2375_v25 = vld [vmem:[%s2805_s26 + $0xf1] sm:$0xff] }
 0x1ee   : > { %v3648_v40 = vadd.f32 %v1069_v54, %v911_v52  ;;  %1217 = vmatmul.f32.gmra.mxu1 %v2420_v3  ;;  %1414 = vmatmul.f32.gmra.mxu2 %v2326_v6  ;;  %v2423_v6 = vld [vmem:[%s2805_s26 + $0xf2] sm:$0xff] }
 0x1f0   : > { %3834 = vst [vmem:[#allocation12_spill] sm:$0xff] %v3648_v40  ;;  %1608 = vmatmul.f32.gmra.mxu3 %v2374_v19 }
 0x1f1   : > { %v681_v50 = vpop.f32.mrf.mxu2  ;;  %v1072_v53 = vpop.f32.mrf.mxu0 }
 0x1f2   : > { %v715_v42 = vadd.f32 %v681_v50, %v520_v44  ;;  %v2328_v50 = vld [vmem:[%s2805_s26 + $0xf8] sm:$0xff] }
 0x1f3   : > { %v878_v8 = vpop.f32.mrf.mxu3  ;;  %v1173_v36 = vpop.f32.mrf.mxu1 }
 0x1f4   : > { %v912_v24 = vadd.f32 %v878_v8, %v715_v42  ;;  %1802 = vmatmul.f32.gmra.mxu0 %v2422_v43  ;;  %v1269_v56 = vadd.f32 %v1173_v36, %v3349_v34  ;;  %v2376_v8 = vld [vmem:[%s2805_s26 + $0xf9] sm:$0xff] }
 0x1f6   : > { %v3654_v54 = vadd.f32 %v1072_v53, %v912_v24  ;;  %1220 = vmatmul.f32.gmra.mxu1 %v2421_v47  ;;  %1417 = vmatmul.f32.gmra.mxu2 %v2327_v30  ;;  %v2424_v30 = vld [vmem:[%s2805_s26 + $0xfa] sm:$0xff] }
 0x1f8   : > { %3835 = vst [vmem:[#allocation13_spill] sm:$0xff] %v3654_v54  ;;  %1611 = vmatmul.f32.gmra.mxu3 %v2375_v25 }
 0x1f9   : > { %v1370_v3 = vpop.f32.mrf.mxu2  ;;  %v1758_v1 = vpop.f32.mrf.mxu0 }
 0x1fa   : > { %v1466_v52 = vadd.f32 %v1370_v3, %v1269_v56  ;;  %v2329_v3 = vld [vmem:[%s2805_s26 + $0x108] sm:$0xff] }
 0x1fb   : > { %v1176_v19 = vpop.f32.mrf.mxu1  ;;  %v1564_v44 = vpop.f32.mrf.mxu3 }
 0x1fc   : > { %v1660_v42 = vadd.f32 %v1564_v44, %v1466_v52  ;;  %1805 = vmatmul.f32.gmra.mxu0 %v2423_v6  ;;  %v1270_v47 = vadd.f32 %v1176_v19, %v3358_v45  ;;  %v2377_v52 = vld [vmem:[%s2805_s26 + $0x109] sm:$0xff] }
 0x1fe   : > { %v1854_v53 = vadd.f32 %v1758_v1, %v1660_v42  ;;  %1223 = vmatmul.f32.gmra.mxu1 %v2422_v43  ;;  %1420 = vmatmul.f32.gmra.mxu2 %v2328_v50 }
 0x200   : > { %1614 = vmatmul.f32.gmra.mxu3 %v2376_v8  ;;  %v1923_v43 = vmul.f32 %v1854_v53, %v1854_v53  ;;  %v2425_v8 = vld [vmem:[%s2805_s26 + $0x10a] sm:$0xff] }
 0x201   : > { %v1373_v34 = vpop.f32.mrf.mxu2  ;;  %v1761_v36 = vpop.f32.mrf.mxu0 }
 0x202   : > { %v1467_v24 = vadd.f32 %v1373_v34, %v1270_v47 }
 0x203   : > { %v1179_v25 = vpop.f32.mrf.mxu1  ;;  %v1567_v56 = vpop.f32.mrf.mxu3 }
 0x204   : > { %v1661_v54 = vadd.f32 %v1567_v56, %v1467_v24  ;;  %1808 = vmatmul.f32.gmra.mxu0 %v2424_v30  ;;  %v1271_v45 = vadd.f32 %v1179_v25, %v3373_v31  ;;  %v2330_v56 = vld [vmem:[%s2805_s26 + $0x110] sm:$0xff] }
 0x206   : > { %v1855_v44 = vadd.f32 %v1761_v36, %v1661_v54  ;;  %1226 = vmatmul.f32.gmra.mxu1 %v2423_v6  ;;  %1423 = vmatmul.f32.gmra.mxu2 %v2329_v3  ;;  %v2378_v54 = vld [vmem:[%s2805_s26 + $0x111] sm:$0xff] }
 0x208   : > { %v1886_v1 = vadd.f32 %v1855_v44, %v1854_v53  ;;  %v1924_v19 = vmul.f32 %v1855_v44, %v1855_v44  ;;  %1617 = vmatmul.f32.gmra.mxu3 %v2377_v52 }
 0x209   : > { %v1376_v50 = vpop.f32.mrf.mxu2  ;;  %v1764_v42 = vpop.f32.mrf.mxu0 }
 0x20a   : > { %v1955_v47 = vadd.f32 %v1924_v19, %v1923_v43  ;;  %v1468_v34 = vadd.f32 %v1376_v50, %v1271_v45  ;;  %v2331_v19 = vld [vmem:[%s2805_s26 + $0x120] sm:$0xff] }
 0x20b   : > { %v1182_v40 = vpop.f32.mrf.mxu1  ;;  %v1570_v24 = vpop.f32.mrf.mxu3 }
 0x20c   : > { %v1662_v29 = vadd.f32 %v1570_v24, %v1468_v34  ;;  %1811 = vmatmul.f32.gmra.mxu0 %v2425_v8  ;;  %v1272_v31 = vadd.f32 %v1182_v40, %v3382_v51 }
 0x20e   : > { %v1856_v6 = vadd.f32 %v1764_v42, %v1662_v29  ;;  %1229 = vmatmul.f32.gmra.mxu1 %v2424_v30  ;;  %1426 = vmatmul.f32.gmra.mxu2 %v2330_v56 }
 0x210   : > { %v1887_v53 = vadd.f32 %v1886_v1, %v1856_v6  ;;  %v1925_v36 = vmul.f32 %v1856_v6, %v1856_v6  ;;  %1620 = vmatmul.f32.gmra.mxu3 %v2378_v54  ;;  %v2284_v6 = vld [vmem:[%s2805_s26 + $0x112] sm:$0xff] }
 0x211   : > { %v1379_v25 = vpop.f32.mrf.mxu2  ;;  %v1767_v3 = vpop.f32.mrf.mxu0 }
 0x212   : > { %v1956_v52 = vadd.f32 %v1955_v47, %v1925_v36  ;;  %v1469_v44 = vadd.f32 %v1379_v25, %v1272_v31  ;;  %v2427_v47 = vld [vmem:[%s2805_s26 + $0x122] sm:$0xff] }
 0x213   : > { %v1185_v43 = vpop.f32.mrf.mxu1  ;;  %v1573_v45 = vpop.f32.mrf.mxu3  ;;  %v2332_v31 = vld [vmem:[%s2805_s26 + $0x128] sm:$0xff] }
 0x214   : > { %v1663_v50 = vadd.f32 %v1573_v45, %v1469_v44  ;;  %1814 = vmatmul.f32.gmra.mxu0 %v3422_v58  ;;  %v1273_v51 = vadd.f32 %v1185_v43, %v3397_v63  ;;  %v2333_v45 = vld [vmem:[%s2805_s26 + $0x138] sm:$0xff] }
 0x216   : > { %v1857_v29 = vadd.f32 %v1767_v3, %v1663_v50  ;;  %1232 = vmatmul.f32.gmra.mxu1 %v2425_v8  ;;  %1429 = vmatmul.f32.gmra.mxu2 %v2331_v19 }
 0x218   : > { %v1888_v40 = vadd.f32 %v1887_v53, %v1857_v29  ;;  %v1926_v30 = vmul.f32 %v1857_v29, %v1857_v29  ;;  %1623 = vmatmul.f32.gmra.mxu3 %v3416_v26 }
 0x219   : > { %v1382_v1 = vpop.f32.mrf.mxu2  ;;  %v1770_v42 = vpop.f32.mrf.mxu0 }
 0x21a   : > { %v1957_v34 = vadd.f32 %v1956_v52, %v1926_v30  ;;  %v1470_v24 = vadd.f32 %v1382_v1, %v1273_v51 }
 0x21b   : > { %v1188_v56 = vpop.f32.mrf.mxu1  ;;  %v1576_v54 = vpop.f32.mrf.mxu3 }
 0x21c   : > { %v1664_v58 = vadd.f32 %v1576_v54, %v1470_v24  ;;  %1817 = vmatmul.f32.gmra.mxu0 %v2427_v47  ;;  %v1274_v63 = vadd.f32 %v1188_v56, %v3406_v10  ;;  %v2286_v24 = vld [vmem:[%s2805_s26 + $0x12a] sm:$0xff]  ;;  %v2334_v56 = vld [vmem:[%s2805_s26 + $0x140] sm:$0xff] }
 0x21e   : > { %v1858_v8 = vadd.f32 %v1770_v42, %v1664_v58  ;;  %1235 = vmatmul.f32.gmra.mxu1 %v2284_v6  ;;  %1432 = vmatmul.f32.gmra.mxu2 %v2332_v31 }
 0x220   : > { %v1889_v53 = vadd.f32 %v1888_v40, %v1858_v8  ;;  %v1927_v36 = vmul.f32 %v1858_v8, %v1858_v8  ;;  %1626 = vmatmul.f32.gmra.mxu3 %v3434_v16 }
 0x221   : > { %v1385_v26 = vpop.f32.mrf.mxu2  ;;  %v1773_v25 = vpop.f32.mrf.mxu0 }
 0x222   : > { %v1958_v3 = vadd.f32 %v1957_v34, %v1927_v36  ;;  %v1471_v52 = vadd.f32 %v1385_v26, %v1274_v63  ;;  %v2287_v36 = vld [vmem:[%s2805_s26 + $0x13a] sm:$0xff]  ;;  %v2335_v26 = vld [vmem:[%s2805_s26 + $0x150] sm:$0xff] }
 0x223   : > { %v1191_v44 = vpop.f32.mrf.mxu1  ;;  %v1579_v43 = vpop.f32.mrf.mxu3 }
 0x224   : > { %v1665_v19 = vadd.f32 %v1579_v43, %v1471_v52  ;;  %1820 = vmatmul.f32.gmra.mxu0 %v3455_v20  ;;  %v1275_v10 = vadd.f32 %v1191_v44, %v3426_v38 }
 0x226   : > { %v1859_v50 = vadd.f32 %v1773_v25, %v1665_v19  ;;  %1238 = vmatmul.f32.gmra.mxu1 %v2427_v47  ;;  %1435 = vmatmul.f32.gmra.mxu2 %v2333_v45 }
 0x228   : > { %v1890_v29 = vadd.f32 %v1889_v53, %v1859_v50  ;;  %v1928_v51 = vmul.f32 %v1859_v50, %v1859_v50  ;;  %1629 = vmatmul.f32.gmra.mxu3 %v3449_v11 }
 0x229   : > { %v1388_v16 = vpop.f32.mrf.mxu2  ;;  %v1776_v40 = vpop.f32.mrf.mxu0 }
 0x22a   : > { %v1959_v30 = vadd.f32 %v1958_v3, %v1928_v51  ;;  %v1472_v1 = vadd.f32 %v1388_v16, %v1275_v10  ;;  %v2288_v10 = vld [vmem:[%s2805_s26 + $0x142] sm:$0xff] }
 0x22b   : > { %v1194_v42 = vpop.f32.mrf.mxu1  ;;  %v1582_v34 = vpop.f32.mrf.mxu3 }
 0x22c   : > { %v1666_v54 = vadd.f32 %v1582_v34, %v1472_v1  ;;  %1823 = vmatmul.f32.gmra.mxu0 %v3470_v57  ;;  %v1276_v38 = vadd.f32 %v1194_v42, %v3439_v55 }
 0x22e   : > { %v1860_v20 = vadd.f32 %v1776_v40, %v1666_v54  ;;  %1241 = vmatmul.f32.gmra.mxu1 %v2286_v24  ;;  %1438 = vmatmul.f32.gmra.mxu2 %v2334_v56  ;;  %v2289_v56 = vld [vmem:[%s2805_s26 + $0x152] sm:$0xff]  ;;  %v2337_v54 = vld [vmem:[%s2805_s26 + $0x168] sm:$0xff] }
 0x230   : > { %v1891_v47 = vadd.f32 %v1890_v29, %v1860_v20  ;;  %v1929_v11 = vmul.f32 %v1860_v20, %v1860_v20  ;;  %1632 = vmatmul.f32.gmra.mxu3 %v3467_v41  ;;  %v2336_v29 = vld [vmem:[%s2805_s26 + $0x158] sm:$0xff] }
 0x231   : > { %v1391_v6 = vpop.f32.mrf.mxu2  ;;  %v1779_v31 = vpop.f32.mrf.mxu0 }
 0x232   : > { %v1960_v58 = vadd.f32 %v1959_v30, %v1929_v11  ;;  %v1473_v8 = vadd.f32 %v1391_v6, %v1276_v38 }
 0x233   : > { %v1197_v63 = vpop.f32.mrf.mxu1  ;;  %v1585_v53 = vpop.f32.mrf.mxu3 }
 0x234   : > { %v1277_v57 = vadd.f32 %v1197_v63, %v3459_v21  ;;  %v1667_v25 = vadd.f32 %v1585_v53, %v1473_v8  ;;  %1826 = vmatmul.f32.gmra.mxu0 %v3491_v12  ;;  %v2290_v63 = vld [vmem:[%s2805_s26 + $0x15a] sm:$0xff]  ;;  %v2338_v53 = vld [vmem:[%s2805_s26 + $0x170] sm:$0xff] }
 0x236   : > { %v1861_v55 = vadd.f32 %v1779_v31, %v1667_v25  ;;  %1244 = vmatmul.f32.gmra.mxu1 %v2287_v36  ;;  %1441 = vmatmul.f32.gmra.mxu2 %v2335_v26 }
 0x238   : > { %v1892_v3 = vadd.f32 %v1891_v47, %v1861_v55  ;;  %v1930_v41 = vmul.f32 %v1861_v55, %v1861_v55  ;;  %1635 = vmatmul.f32.gmra.mxu3 %v3485_v4 }
 0x239   : > { %v1394_v52 = vpop.f32.mrf.mxu2  ;;  %v1782_v44 = vpop.f32.mrf.mxu0 }
 0x23a   : > { %v1961_v43 = vadd.f32 %v1960_v58, %v1930_v41  ;;  %v1474_v45 = vadd.f32 %v1394_v52, %v1277_v57 }
 0x23b   : > { %v1200_v19 = vpop.f32.mrf.mxu1  ;;  %v1588_v50 = vpop.f32.mrf.mxu3 }
 0x23c   : > { %v1278_v21 = vadd.f32 %v1200_v19, %v3474_v61  ;;  %v1668_v12 = vadd.f32 %v1588_v50, %v1474_v45  ;;  %1829 = vmatmul.f32.gmra.mxu0 %v3506_v59 }
 0x23e   : > { %v1862_v51 = vadd.f32 %v1782_v44, %v1668_v12  ;;  %1247 = vmatmul.f32.gmra.mxu1 %v2288_v10  ;;  %1444 = vmatmul.f32.gmra.mxu2 %v2336_v29  ;;  %v2291_v44 = vld [vmem:[%s2805_s26 + $0x16a] sm:$0xff]  ;;  %v2435_v29 = vld [vmem:[%s2805_s26 + $0x182] sm:$0xff] }
 0x240   : > { %v1893_v16 = vadd.f32 %v1892_v3, %v1862_v51  ;;  %v1931_v4 = vmul.f32 %v1862_v51, %v1862_v51  ;;  %1638 = vmatmul.f32.gmra.mxu3 %v3503_v28 }
 0x241   : > { %v1397_v40 = vpop.f32.mrf.mxu2  ;;  %v1785_v30 = vpop.f32.mrf.mxu0 }
 0x242   : > { %v1962_v1 = vadd.f32 %v1961_v43, %v1931_v4  ;;  %v1475_v42 = vadd.f32 %v1397_v40, %v1278_v21  ;;  %v2340_v4 = vld [vmem:[%s2805_s26 + $0x188] sm:$0xff] }
 0x243   : > { %v1203_v34 = vpop.f32.mrf.mxu1  ;;  %v1591_v24 = vpop.f32.mrf.mxu3  ;;  %v3836_v40 = vld [vmem:[#allocation8_spill] sm:$0xff] }
 0x244   : > { %v1279_v61 = vadd.f32 %v1203_v34, %v3495_v32  ;;  %v1669_v59 = vadd.f32 %v1591_v24, %v1475_v42  ;;  %1832 = vmatmul.f32.gmra.mxu0 %v3518_v9 }
 0x246   : > { %v1863_v20 = vadd.f32 %v1785_v30, %v1669_v59  ;;  %1250 = vmatmul.f32.gmra.mxu1 %v2289_v56  ;;  %1447 = vmatmul.f32.gmra.mxu2 %v2337_v54  ;;  %v2436_v56 = vld [vmem:[%s2805_s26 + $0x18a] sm:$0xff] }
 0x248   : > { %v1894_v38 = vadd.f32 %v1893_v16, %v1863_v20  ;;  %v1932_v28 = vmul.f32 %v1863_v20, %v1863_v20  ;;  %1641 = vmatmul.f32.gmra.mxu3 %v3515_v23  ;;  %v2292_v16 = vld [vmem:[%s2805_s26 + $0x172] sm:$0xff] }
 0x249   : > { %v1400_v47 = vpop.f32.mrf.mxu2  ;;  %v1788_v11 = vpop.f32.mrf.mxu0 }
 0x24a   : > { %v1963_v6 = vadd.f32 %v1962_v1, %v1932_v28  ;;  %v1476_v31 = vadd.f32 %v1400_v47, %v1279_v61  ;;  %v3837_v28 = vld [vmem:[#allocation9_spill] sm:$0xff] }
 0x24b   : > { %v1206_v58 = vpop.f32.mrf.mxu1  ;;  %v1594_v8 = vpop.f32.mrf.mxu3 }
 0x24c   : > { %v1280_v32 = vadd.f32 %v1206_v58, %v3510_v49  ;;  %v1670_v9 = vadd.f32 %v1594_v8, %v1476_v31  ;;  %1835 = vmatmul.f32.gmra.mxu0 %v3530_v39  ;;  %v2339_v49 = vld [vmem:[%s2805_s26 + $0x180] sm:$0xff] }
 0x24e   : > { %v1864_v36 = vadd.f32 %v1788_v11, %v1670_v9  ;;  %1253 = vmatmul.f32.gmra.mxu1 %v2290_v63  ;;  %1450 = vmatmul.f32.gmra.mxu2 %v2338_v53  ;;  %v2437_v53 = vld [vmem:[%s2805_s26 + $0x19a] sm:$0xff] }
 0x250   : > { %v1895_v26 = vadd.f32 %v1894_v38, %v1864_v36  ;;  %v1933_v23 = vmul.f32 %v1864_v36, %v1864_v36  ;;  %1644 = vmatmul.f32.gmra.mxu3 %v3527_v27  ;;  %v2341_v38 = vld [vmem:[%s2805_s26 + $0x198] sm:$0xff] }
 0x251   : > { %v1403_v57 = vpop.f32.mrf.mxu2  ;;  %v1791_v25 = vpop.f32.mrf.mxu0 }
 0x252   : > { %v1964_v55 = vadd.f32 %v1963_v6, %v1933_v23  ;;  %v1477_v3 = vadd.f32 %v1403_v57, %v1280_v32  ;;  %v2389_v6 = vld [vmem:[%s2805_s26 + $0x199] sm:$0xff] }
 0x253   : > { %v1209_v41 = vpop.f32.mrf.mxu1  ;;  %v1597_v52 = vpop.f32.mrf.mxu3  ;;  %v2342_v23 = vld [vmem:[%s2805_s26 + $0x1a0] sm:$0xff]  ;;  %v3838_v57 = vld [vmem:[#allocation10_spill] sm:$0xff] }
 0x254   : > { %v1281_v43 = vadd.f32 %v1209_v41, %v3522_v0  ;;  %v1671_v39 = vadd.f32 %v1597_v52, %v1477_v3  ;;  %1838 = vmatmul.f32.gmra.mxu0 %v3542_v18  ;;  %v2390_v3 = vld [vmem:[%s2805_s26 + $0x1a1] sm:$0xff] }
 0x256   : > { %v1865_v45 = vadd.f32 %v1791_v25, %v1671_v39  ;;  %1256 = vmatmul.f32.gmra.mxu1 %v2291_v44  ;;  %1453 = vmatmul.f32.gmra.mxu2 %v2339_v49  ;;  %v2438_v39 = vld [vmem:[%s2805_s26 + $0x1a2] sm:$0xff]  ;;  %s3740_s26 = sand.u32 1, %s2661_s13  }
 0x257   : > { %s3743_s29 = scalar_lea.vmem [#allocation2], %s3740_s26  ;;  %s3747_s30 = scalar_lea.vmem [#allocation4], %s3740_s26 }
 0x258   : > { %v1896_v27 = vadd.f32 %v1895_v26, %v1865_v45  ;;  %v1934_v19 = vmul.f32 %v1865_v45, %v1865_v45  ;;  %1647 = vmatmul.f32.gmra.mxu3 %v3539_v17  ;;  %s2013_s10 = sshll.u32 %s3743_s29, 4  ;;  %s2026_s18 = sshll.u32 %s3747_s30, 4  ;;  %s2014_s10 = int_to_ptr.vmem [resolvable:$true] %s2013_s10  ;;  %s3771_s18 = int_to_ptr.vmem [resolvable:$true] %s2026_s18 }
 0x259   : > { %v1406_v50 = vpop.f32.mrf.mxu2  ;;  %v1794_v10 = vpop.f32.mrf.mxu0  ;;  %s1999_s15 = scalar_lea.sflag [#allocation3], %s3740_s26 }
 0x25a   : > { %v1965_v21 = vadd.f32 %v1964_v55, %v1934_v19  ;;  %v1478_v12 = vadd.f32 %v1406_v50, %v1281_v43 }
 0x25b   : > { %v1212_v51 = vpop.f32.mrf.mxu1  ;;  %v1600_v0 = vpop.f32.mrf.mxu3 }
 0x25c   : > { %v1282_v30 = vadd.f32 %v1212_v51, %v3836_v40  ;;  %v1672_v18 = vadd.f32 %v1600_v0, %v1478_v12  ;;  %1841 = vmatmul.f32.gmra.mxu0 %v2435_v29 }
 0x25e   : > { %v1866_v1 = vadd.f32 %v1794_v10, %v1672_v18  ;;  %1259 = vmatmul.f32.gmra.mxu1 %v2292_v16  ;;  %1456 = vmatmul.f32.gmra.mxu2 %v2340_v4 }
 0x260   : > { %v1897_v17 = vadd.f32 %v1896_v27, %v1866_v1  ;;  %v1935_v42 = vmul.f32 %v1866_v1, %v1866_v1  ;;  %1650 = vmatmul.f32.gmra.mxu3 %v3551_v35 }
 0x261   : > { %v1409_v34 = vpop.f32.mrf.mxu2  ;;  %v1797_v24 = vpop.f32.mrf.mxu0 }
 0x262   : > { %v1966_v54 = vadd.f32 %v1965_v21, %v1935_v42  ;;  %v1479_v61 = vadd.f32 %v1409_v34, %v1282_v30 }
 0x263   : > { %v1215_v59 = vpop.f32.mrf.mxu1  ;;  %v1603_v20 = vpop.f32.mrf.mxu3 }
 0x264   : > { %v1283_v47 = vadd.f32 %v1215_v59, %v3837_v28  ;;  %v1673_v11 = vadd.f32 %v1603_v20, %v1479_v61  ;;  %1844 = vmatmul.f32.gmra.mxu0 %v2436_v56 }
 0x266   : > { %v1867_v31 = vadd.f32 %v1797_v24, %v1673_v11  ;;  %1262 = vmatmul.f32.gmra.mxu1 %v2435_v29  ;;  %1459 = vmatmul.f32.gmra.mxu2 %v2341_v38 }
 0x268   : > { %v1898_v35 = vadd.f32 %v1897_v17, %v1867_v31  ;;  %v1936_v58 = vmul.f32 %v1867_v31, %v1867_v31  ;;  %1653 = vmatmul.f32.gmra.mxu3 %v2389_v6 }
 0x269   : > { %v1412_v8 = vpop.f32.mrf.mxu2  ;;  %v1800_v63 = vpop.f32.mrf.mxu0 }
 0x26a   : > { %v1967_v32 = vadd.f32 %v1966_v54, %v1936_v58  ;;  %v1480_v9 = vadd.f32 %v1412_v8, %v1283_v47 }
 0x26b   : > { %v1218_v36 = vpop.f32.mrf.mxu1  ;;  %v1606_v26 = vpop.f32.mrf.mxu3 }
 0x26c   : > { %v1284_v25 = vadd.f32 %v1218_v36, %v3838_v57  ;;  %v1674_v55 = vadd.f32 %v1606_v26, %v1480_v9  ;;  %1847 = vmatmul.f32.gmra.mxu0 %v2437_v53 }
 0x26e   : > { %v1868_v41 = vadd.f32 %v1800_v63, %v1674_v55  ;;  %1265 = vmatmul.f32.gmra.mxu1 %v2436_v56  ;;  %1462 = vmatmul.f32.gmra.mxu2 %v2342_v23 }
 0x270   : > { %v1899_v52 = vadd.f32 %v1898_v35, %v1868_v41  ;;  %v1937_v44 = vmul.f32 %v1868_v41, %v1868_v41  ;;  %1656 = vmatmul.f32.gmra.mxu3 %v2390_v3 }
 0x271   : > { %v1415_v49 = vpop.f32.mrf.mxu2  ;;  %v1803_v43 = vpop.f32.mrf.mxu0 }
 0x272   : > { %v1968_v45 = vadd.f32 %v1967_v32, %v1937_v44  ;;  %v1481_v27 = vadd.f32 %v1415_v49, %v1284_v25 }
 0x273   : > { %v1221_v19 = vpop.f32.mrf.mxu1  ;;  %v1609_v50 = vpop.f32.mrf.mxu3 }
 0x274   : > { %v1285_v10 = vadd.f32 %v1221_v19, %v3564_v46  ;;  %v1675_v29 = vadd.f32 %v1609_v50, %v1481_v27  ;;  %1850 = vmatmul.f32.gmra.mxu0 %v2438_v39 }
 0x276   : > { %v1869_v21 = vadd.f32 %v1803_v43, %v1675_v29 }
 0x278   : > { %v1900_v12 = vadd.f32 %v1899_v52, %v1869_v21  ;;  %v1938_v51 = vmul.f32 %v1869_v21, %v1869_v21 }
 0x279   : > { %v1418_v0 = vpop.f32.mrf.mxu2  ;;  %v1806_v16 = vpop.f32.mrf.mxu0 }
 0x27a   : > { %v1969_v4 = vadd.f32 %v1968_v45, %v1938_v51  ;;  %v1482_v40 = vadd.f32 %v1418_v0, %v1285_v10 }
 0x27b   : > { %v1224_v30 = vpop.f32.mrf.mxu1  ;;  %v1612_v18 = vpop.f32.mrf.mxu3 }
 0x27c   : > { %v1286_v1 = vadd.f32 %v1224_v30, %v3570_v14  ;;  %v1676_v17 = vadd.f32 %v1612_v18, %v1482_v40 }
 0x27e   : > { %v1870_v42 = vadd.f32 %v1806_v16, %v1676_v17 }
 0x280   : > { %v1901_v34 = vadd.f32 %v1900_v12, %v1870_v42  ;;  %v1939_v24 = vmul.f32 %v1870_v42, %v1870_v42 }
 0x281   : > { %v1421_v56 = vpop.f32.mrf.mxu2  ;;  %v1809_v54 = vpop.f32.mrf.mxu0 }
 0x282   : > { %v1970_v46 = vadd.f32 %v1969_v4, %v1939_v24  ;;  %v1483_v61 = vadd.f32 %v1421_v56, %v1286_v1 }
 0x283   : > { %v1227_v59 = vpop.f32.mrf.mxu1  ;;  %v1615_v20 = vpop.f32.mrf.mxu3 }
 0x284   : > { %v1287_v38 = vadd.f32 %v1227_v59, %v3576_v2  ;;  %v1677_v28 = vadd.f32 %v1615_v20, %v1483_v61 }
 0x286   : > { %v1871_v47 = vadd.f32 %v1809_v54, %v1677_v28 }
 0x288   : > { %v1902_v11 = vadd.f32 %v1901_v34, %v1871_v47  ;;  %v1940_v6 = vmul.f32 %v1871_v47, %v1871_v47 }
 0x289   : > { %v1424_v31 = vpop.f32.mrf.mxu2  ;;  %v1812_v35 = vpop.f32.mrf.mxu0 }
 0x28a   : > { %v1971_v58 = vadd.f32 %v1970_v46, %v1940_v6  ;;  %v1484_v14 = vadd.f32 %v1424_v31, %v1287_v38 }
 0x28b   : > { %v1230_v8 = vpop.f32.mrf.mxu1  ;;  %v1618_v63 = vpop.f32.mrf.mxu3 }
 0x28c   : > { %v1288_v53 = vadd.f32 %v1230_v8, %v3582_v15  ;;  %v1678_v32 = vadd.f32 %v1618_v63, %v1484_v14 }
 0x28e   : > { %v1872_v9 = vadd.f32 %v1812_v35, %v1678_v32 }
 0x290   : > { %v1903_v36 = vadd.f32 %v1902_v11, %v1872_v9  ;;  %v1941_v26 = vmul.f32 %v1872_v9, %v1872_v9 }
 0x291   : > { %v1427_v23 = vpop.f32.mrf.mxu2  ;;  %v1815_v57 = vpop.f32.mrf.mxu0 }
 0x292   : > { %v1972_v25 = vadd.f32 %v1971_v58, %v1941_v26  ;;  %v1485_v2 = vadd.f32 %v1427_v23, %v1288_v53 }
 0x293   : > { %v1233_v55 = vpop.f32.mrf.mxu1  ;;  %v1621_v3 = vpop.f32.mrf.mxu3 }
 0x294   : > { %v1289_v41 = vadd.f32 %v1233_v55, %v3588_v7  ;;  %v1679_v52 = vadd.f32 %v1621_v3, %v1485_v2 }
 0x296   : > { %v1873_v44 = vadd.f32 %v1815_v57, %v1679_v52 }
 0x298   : > { %v1904_v49 = vadd.f32 %v1903_v36, %v1873_v44  ;;  %v1942_v43 = vmul.f32 %v1873_v44, %v1873_v44 }
 0x299   : > { %v1430_v39 = vpop.f32.mrf.mxu2  ;;  %v1818_v45 = vpop.f32.mrf.mxu0 }
 0x29a   : > { %v1973_v27 = vadd.f32 %v1972_v25, %v1942_v43  ;;  %v1486_v15 = vadd.f32 %v1430_v39, %v1289_v41 }
 0x29b   : > { %v1236_v19 = vpop.f32.mrf.mxu1  ;;  %v1624_v50 = vpop.f32.mrf.mxu3 }
 0x29c   : > { %v1680_v10 = vadd.f32 %v1624_v50, %v1486_v15  ;;  %v1290_v21 = vadd.f32 %v1236_v19, %v3594_v37 }
 0x29e   : > { %v1874_v29 = vadd.f32 %v1818_v45, %v1680_v10 }
 0x2a0   : > { %v1905_v12 = vadd.f32 %v1904_v49, %v1874_v29  ;;  %v1943_v51 = vmul.f32 %v1874_v29, %v1874_v29 }
 0x2a1   : > { %v1433_v0 = vpop.f32.mrf.mxu2  ;;  %v1821_v16 = vpop.f32.mrf.mxu0 }
 0x2a2   : > { %v1974_v4 = vadd.f32 %v1973_v27, %v1943_v51  ;;  %v1487_v7 = vadd.f32 %v1433_v0, %v1290_v21 }
 0x2a3   : > { %v1239_v40 = vpop.f32.mrf.mxu1  ;;  %v1627_v30 = vpop.f32.mrf.mxu3 }
 0x2a4   : > { %v1681_v18 = vadd.f32 %v1627_v30, %v1487_v7  ;;  %v1291_v17 = vadd.f32 %v1239_v40, %v3600_v33 }
 0x2a6   : > { %v1875_v1 = vadd.f32 %v1821_v16, %v1681_v18 }
 0x2a8   : > { %v1906_v42 = vadd.f32 %v1905_v12, %v1875_v1  ;;  %v1944_v34 = vmul.f32 %v1875_v1, %v1875_v1 }
 0x2a9   : > { %v1436_v24 = vpop.f32.mrf.mxu2  ;;  %v1824_v56 = vpop.f32.mrf.mxu0 }
 0x2aa   : > { %v1975_v54 = vadd.f32 %v1974_v4, %v1944_v34  ;;  %v1488_v46 = vadd.f32 %v1436_v24, %v1291_v17 }
 0x2ab   : > { %v1242_v61 = vpop.f32.mrf.mxu1  ;;  %v1630_v37 = vpop.f32.mrf.mxu3 }
 0x2ac   : > { %v1682_v59 = vadd.f32 %v1630_v37, %v1488_v46  ;;  %v1292_v38 = vadd.f32 %v1242_v61, %v3606_v62 }
 0x2ae   : > { %v1876_v20 = vadd.f32 %v1824_v56, %v1682_v59 }
 0x2b0   : > { %v1907_v28 = vadd.f32 %v1906_v42, %v1876_v20  ;;  %v1945_v47 = vmul.f32 %v1876_v20, %v1876_v20 }
 0x2b1   : > { %v1439_v11 = vpop.f32.mrf.mxu2  ;;  %v1827_v6 = vpop.f32.mrf.mxu0 }
 0x2b2   : > { %v1976_v31 = vadd.f32 %v1975_v54, %v1945_v47  ;;  %v1489_v35 = vadd.f32 %v1439_v11, %v1292_v38  ;;  %v2679_v11 = vmov 0.0  }
 0x2b3   : > { %v1245_v58 = vpop.f32.mrf.mxu1  ;;  %v1633_v33 = vpop.f32.mrf.mxu3  ;;  %194 = vst [vmem:[%s3743_s29] sm:$0x1] %v2679_v11 }
 0x2b4   : > { %v1683_v14 = vadd.f32 %v1633_v33, %v1489_v35  ;;  %v1293_v63 = vadd.f32 %v1245_v58, %v3612_v48  ;;  %195 = vst [vmem:[%s3747_s30] sm:$0x1] %v2679_v11 }
 0x2b6   : > { %v1877_v8 = vadd.f32 %v1827_v6, %v1683_v14 }
 0x2b8   : > { %v1908_v53 = vadd.f32 %v1907_v28, %v1877_v8  ;;  %v1946_v32 = vmul.f32 %v1877_v8, %v1877_v8 }
 0x2b9   : > { %v1442_v9 = vpop.f32.mrf.mxu2  ;;  %v1830_v36 = vpop.f32.mrf.mxu0 }
 0x2ba   : > { %v1977_v26 = vadd.f32 %v1976_v31, %v1946_v32  ;;  %v1490_v23 = vadd.f32 %v1442_v9, %v1293_v63 }
 0x2bb   : > { %v1248_v57 = vpop.f32.mrf.mxu1  ;;  %v1636_v62 = vpop.f32.mrf.mxu3 }
 0x2bc   : > { %v1684_v25 = vadd.f32 %v1636_v62, %v1490_v23  ;;  %v1294_v55 = vadd.f32 %v1248_v57, %v3618_v60 }
 0x2be   : > { %v1878_v2 = vadd.f32 %v1830_v36, %v1684_v25  ;;  %v3840_v36 = vld [vmem:[#allocation12_spill] sm:$0xff] }
 0x2c0   : > { %v1909_v3 = vadd.f32 %v1908_v53, %v1878_v2  ;;  %v1947_v41 = vmul.f32 %v1878_v2, %v1878_v2 }
 0x2c1   : > { %v1445_v52 = vpop.f32.mrf.mxu2  ;;  %v1833_v44 = vpop.f32.mrf.mxu0 }
 0x2c2   : > { %v1978_v49 = vadd.f32 %v1977_v26, %v1947_v41  ;;  %v1491_v43 = vadd.f32 %v1445_v52, %v1294_v55 }
 0x2c3   : > { %v1251_v39 = vpop.f32.mrf.mxu1  ;;  %v1639_v48 = vpop.f32.mrf.mxu3 }
 0x2c4   : > { %v1685_v45 = vadd.f32 %v1639_v48, %v1491_v43  ;;  %v1295_v15 = vadd.f32 %v1251_v39, %v3624_v5 }
 0x2c6   : > { %v1879_v27 = vadd.f32 %v1833_v44, %v1685_v45 }
 0x2c8   : > { %v1910_v19 = vadd.f32 %v1909_v3, %v1879_v27  ;;  %v1948_v50 = vmul.f32 %v1879_v27, %v1879_v27 }
 0x2c9   : > { %v1448_v10 = vpop.f32.mrf.mxu2  ;;  %v1836_v29 = vpop.f32.mrf.mxu0 }
 0x2ca   : > { %v1979_v21 = vadd.f32 %v1978_v49, %v1948_v50  ;;  %v1492_v12 = vadd.f32 %v1448_v10, %v1295_v15  ;;  %v3841_v49 = vld [vmem:[#allocation13_spill] sm:$0xff] }
 0x2cb   : > { %v1254_v51 = vpop.f32.mrf.mxu1  ;;  %v1642_v60 = vpop.f32.mrf.mxu3 }
 0x2cc   : > { %v1686_v0 = vadd.f32 %v1642_v60, %v1492_v12  ;;  %v1296_v4 = vadd.f32 %v1254_v51, %v3630_v13 }
 0x2ce   : > { %v1880_v16 = vadd.f32 %v1836_v29, %v1686_v0 }
 0x2d0   : > { %v1911_v7 = vadd.f32 %v1910_v19, %v1880_v16  ;;  %v1949_v40 = vmul.f32 %v1880_v16, %v1880_v16 }
 0x2d1   : > { %v1451_v30 = vpop.f32.mrf.mxu2  ;;  %v1839_v18 = vpop.f32.mrf.mxu0 }
 0x2d2   : > { %v1980_v1 = vadd.f32 %v1979_v21, %v1949_v40  ;;  %v1493_v17 = vadd.f32 %v1451_v30, %v1296_v4 }
 0x2d3   : > { %v1257_v5 = vpop.f32.mrf.mxu1  ;;  %v1645_v42 = vpop.f32.mrf.mxu3 }
 0x2d4   : > { %v1687_v34 = vadd.f32 %v1645_v42, %v1493_v17  ;;  %v1297_v56 = vadd.f32 %v1257_v5, %v3636_v22  ;;  %v3839_v22 = vld [vmem:[#allocation11_spill] sm:$0xff] }
 0x2d5   : > { %v1992_v17 = vld [vmem:[%s3743_s29] sm:$0x1] }
 0x2d6   : > { %v1881_v24 = vadd.f32 %v1839_v18, %v1687_v34  ;;  %v1995_v34 = vld [vmem:[%s3747_s30] sm:$0x1] }
 0x2d8   : > { %v1912_v54 = vadd.f32 %v1911_v7, %v1881_v24  ;;  %v1950_v46 = vmul.f32 %v1881_v24, %v1881_v24 }
 0x2d9   : > { %v1454_v61 = vpop.f32.mrf.mxu2  ;;  %v1842_v13 = vpop.f32.mrf.mxu0 }
 0x2da   : > { %v1981_v37 = vadd.f32 %v1980_v1, %v1950_v46  ;;  %v1494_v59 = vadd.f32 %v1454_v61, %v1297_v56 }
 0x2db   : > { %v1260_v20 = vpop.f32.mrf.mxu1  ;;  %v1648_v38 = vpop.f32.mrf.mxu3 }
 0x2dc   : > { %v1688_v28 = vadd.f32 %v1648_v38, %v1494_v59  ;;  %v1298_v6 = vadd.f32 %v1260_v20, %v3839_v22 }
 0x2de   : > { %v1882_v47 = vadd.f32 %v1842_v13, %v1688_v28 }
 0x2e0   : > { %v1913_v31 = vadd.f32 %v1912_v54, %v1882_v47  ;;  %v1951_v35 = vmul.f32 %v1882_v47, %v1882_v47 }
 0x2e1   : > { %v1457_v58 = vpop.f32.mrf.mxu2  ;;  %v1845_v33 = vpop.f32.mrf.mxu0 }
 0x2e2   : > { %v1982_v14 = vadd.f32 %v1981_v37, %v1951_v35  ;;  %v1495_v8 = vadd.f32 %v1457_v58, %v1298_v6 }
 0x2e3   : > { %v1263_v63 = vpop.f32.mrf.mxu1  ;;  %v1651_v53 = vpop.f32.mrf.mxu3 }
 0x2e4   : > { %v1689_v32 = vadd.f32 %v1651_v53, %v1495_v8  ;;  %v1299_v26 = vadd.f32 %v1263_v63, %v3840_v36 }
 0x2e6   : > { %v1883_v9 = vadd.f32 %v1845_v33, %v1689_v32 }
 0x2e8   : > { %v1914_v23 = vadd.f32 %v1913_v31, %v1883_v9  ;;  %v1952_v57 = vmul.f32 %v1883_v9, %v1883_v9 }
 0x2e9   : > { %v1460_v62 = vpop.f32.mrf.mxu2  ;;  %v1848_v25 = vpop.f32.mrf.mxu0 }
 0x2ea   : > { %v1983_v2 = vadd.f32 %v1982_v14, %v1952_v57  ;;  %v1496_v55 = vadd.f32 %v1460_v62, %v1299_v26 }
 0x2eb   : > { %v1654_v3 = vpop.f32.mrf.mxu3  ;;  %v1266_v52 = vpop.f32.mrf.mxu1 }
 0x2ec   : > { %v1690_v41 = vadd.f32 %v1654_v3, %v1496_v55  ;;  %v1300_v43 = vadd.f32 %v1266_v52, %v3841_v49 }
 0x2ee   : > { %v1884_v44 = vadd.f32 %v1848_v25, %v1690_v41 }
 0x2f0   : > { %v1915_v39 = vadd.f32 %v1914_v23, %v1884_v44  ;;  %v1953_v48 = vmul.f32 %v1884_v44, %v1884_v44 }
 0x2f1   : > { %v1463_v45 = vpop.f32.mrf.mxu2  ;;  %v1851_v50 = vpop.f32.mrf.mxu0 }
 0x2f2   : > { %v1984_v27 = vadd.f32 %v1983_v2, %v1953_v48  ;;  %v1497_v15 = vadd.f32 %v1463_v45, %v1300_v43 }
 0x2f3   : > { %v1657_v19 = vpop.f32.mrf.mxu3 }
 0x2f4   : > { %v1691_v10 = vadd.f32 %v1657_v19, %v1497_v15 }
 0x2f6   : > { %v1885_v29 = vadd.f32 %v1851_v50, %v1691_v10 }
 0x2f8   : > { %v1916_v21 = vadd.f32 %v1915_v39, %v1885_v29  ;;  %v1954_v12 = vmul.f32 %v1885_v29, %v1885_v29 }
 0x2fa   : > { %v1917_v51 = vrot.slane %v1916_v21, 4  ;;  %v1985_v60 = vadd.f32 %v1984_v27, %v1954_v12 }
 0x2fc   : > { %v1918_v0 = vadd.f32 %v1917_v51, %v1916_v21  ;;  %v1986_v16 = vrot.slane %v1985_v60, 4 }
 0x2fe   : > { %v1919_v4 = vrot.slane %v1918_v0, 2  ;;  %v1987_v7 = vadd.f32 %v1986_v16, %v1985_v60 }
 0x300   : > { %v1920_v40 = vadd.f32 %v1919_v4, %v1918_v0  ;;  %v1988_v30 = vrot.slane %v1987_v7, 2 }
 0x302   : > { %v1921_v18 = vrot.slane %v1920_v40, 1  ;;  %v1989_v1 = vadd.f32 %v1988_v30, %v1987_v7 }
 0x304   : > { %v1922_v5 = vadd.f32 %v1921_v18, %v1920_v40  ;;  %v1990_v42 = vrot.slane %v1989_v1, 1 }
 0x306   : > { %v1993_v24 = vadd.f32 %v1992_v17, %v1922_v5  ;;  %v1991_v56 = vadd.f32 %v1990_v42, %v1989_v1 }
 0x308   : > { %1994 = vst [vmem:[%s3743_s29] sm:$0x1] %v1993_v24  ;;  %v1996_v54 = vadd.f32 %v1995_v34, %v1991_v56 }
 0x309   : > { %2594 = shalt.err (!%p2591_p5)
}
 0x30a   : > { %2506 = dma.vmem_to_hbm [thread:$0]  (%p2740_p4), %s2014_s10, 16, %s2016_s11, %s1999_s15   ;;  %1997 = vst [vmem:[%s3747_s30] sm:$0x1] %v1996_v54 }
 0x30b   : > { %s2003_s29 = scalar_lea.sflag [#allocation5], %s3740_s26  ;;  %s2609_s7 = sshra.s32 %s2029_s19, 4  ;;  %s2610_s7 = int_to_ptr.hbm [resolvable:$true] %s2609_s7 }
 0x30c   : > { %s2611_s8 = scalar_lea.hbm %s2610_s7, 1  ;;  %s2615_s23 = scalar_lea.hbm %s3827_s3, 2 }
 0x30d   : > { %p2612_p6 = scmp.ne.s32.totalorder %s2610_s7, %s2611_s8  ;;  %p2616_p10 = scmp.lt.s32.totalorder %s2610_s7, %s3827_s3 }
 0x30e   : > { %p2617_p11 = scmp.lt.s32.totalorder %s2615_s23, %s2611_s8 }
 0x30f   : > { %p2613_p7 = pnand %p2612_p6, %p2740_p4 }
 0x310   : > { %p2618_p12 = por %p2617_p11, %p2616_p10 }
 0x311   : > { %p2614_p9 = pneg %p2613_p7 }
 0x313   : > { %p2619_p13 = pnand %p2618_p12, %p2614_p9 }
 0x315   : > { %2622 = shalt.err (!%p2619_p13)
}
 0x316   : > { %2507 = dma.vmem_to_hbm [thread:$0]  (%p2740_p4), %s3771_s18, 16, %s2029_s19, %s2003_s29  }
 0x317 PF: > { %p2517_p0 = scmp.ge.s32.totalorder %s2677_s17, 2  ;;  %s2040_s26 = sand.u32 1, %s2657_s12  }
 0x318   : > { %s2041_s30 = scalar_lea.sflag [#allocation3], %s2040_s26 }
 0x319   : > { %p2511_p1 = pnand %p2517_p0, %p2747_p8 }
 0x31b   : > { %p2512_p2 = pneg %p2511_p1 }
 0x31d   : > { %2648 = dma.done.wait (%p2512_p2), %s2041_s30, 16  }
 0x31e   : > { %2650 = vsyncadd (%p2512_p2), %s2041_s30, 4294967280  ;;  %s2050_s10 = scalar_lea.sflag [#allocation5], %s2040_s26 }
 0x31f   : > { %2652 = dma.done.wait (%p2512_p2), %s2050_s10, 16  }
 0x320   : > { %2654 = vsyncadd (%p2512_p2), %s2050_s10, 4294967280  ;;  %s20_s17 = sadd.s32 1, %s2677_s17   ;;  %s3842_s12 = smov %s2661_s13 }
 0x321   : > { %p17_p3 = scmp.ge.s32.totalorder %s20_s17, 4   ;;  %s3843_s13 = smov %s2665_s14 }
 0x322   : > { %s3844_s14 = smov %s2753_s25  ;;  %s3845_s15 = smov %s2673_s16 }
 0x323   : > { %s3846_s16 = smov %s3848_s20  ;;  %19 = sbr.rel (!%p17_p3) target bundleno = 6 (0x6), region = 95 }
 0x328   :  { %2055 = vsyncpa [#allocation3], 1 }
 0x329   :  { %2057 = vsyncpa [#allocation3 + $0x1], 1 }
 0x32a   :  { %2058 = vsyncpa [#allocation5], 1 }
 0x32b   :  { %2060 = vsyncpa [#allocation5 + $0x1], 1 }

</bundles_post_ra>
